<compile_context>
chip_gen: v7x
topology: tpu7x:2x2x1
jax: 0.10.0
libtpu: 0.0.40
codegen_flags: <defaults>
</compile_context>

<pallas_src>
import math

import jax
import jax.numpy as jnp
from jax.experimental import pallas as pl
from jax.experimental.pallas import tpu as pltpu  # noqa: F401  (TPU backend)

# ----------------------------- model config ---------------------------------
VOCAB = 50
HIDDEN = 32
NUM_HEADS = 2
HEAD_DIM = HIDDEN // NUM_HEADS
INTERMEDIATE = 64
NUM_LAYERS = 2
MAX_POS = 16
SEQ = 8
BATCH = 2
LN_EPS = 1e-12  # BERT default
ATTN_SCALE = 1.0 / math.sqrt(HEAD_DIM)


# ------------------------------ fused kernel ---------------------------------
def _bert_fused_kernel(
    x_ref, mask_ref,                       # activations in, additive mask
    eg_ref, eb_ref,                        # embedding LN
    qkvw_ref, qkvb_ref,                    # [L, H, 3H], [L, 1, 3H]
    aow_ref, aob_ref, alg_ref, alb_ref,    # attn out proj + attn LN
    iw_ref, ib_ref, ow_ref, ob_ref,        # FFN
    olg_ref, olb_ref,                      # output LN
    pw_ref, pb_ref,                        # pooler
    out_ref,                               # [B, H] pooled output
):
    B, S, H, NH, Dh = BATCH, SEQ, HIDDEN, NUM_HEADS, HEAD_DIM

    def layernorm(x, g, b):
        mu = jnp.mean(x, axis=-1, keepdims=True)
        var = jnp.mean((x - mu) ** 2, axis=-1, keepdims=True)
        return (x - mu) * jax.lax.rsqrt(var + LN_EPS) * g + b

    # Embedding layernorm (embeddings were summed in JAX, LN done here).
    x = layernorm(x_ref[...], eg_ref[...], eb_ref[...])            # [B*S, H]
    mask = mask_ref[...]                                           # [B, S]

    for l in range(NUM_LAYERS):                                    # static unroll
        # ---- fused QKV projection: one [B*S, H] x [H, 3H] MXU pass ----------
        qkv = jnp.dot(x, qkvw_ref[l],
                      preferred_element_type=jnp.float32) + qkvb_ref[l]

        # ---- attention: static loop over (batch, head), 2-D MXU dots --------
        ctx_rows = []
        for b in range(B):
            m_b = mask[b:b + 1, :]                                 # [1, S]
            head_ctx = []
            for h in range(NH):
                q_bh = qkv[b * S:(b + 1) * S, h * Dh:(h + 1) * Dh]
                k_bh = qkv[b * S:(b + 1) * S, H + h * Dh:H + (h + 1) * Dh]
                v_bh = qkv[b * S:(b + 1) * S, 2 * H + h * Dh:2 * H + (h + 1) * Dh]
                s = jax.lax.dot_general(
                    q_bh, k_bh, (((1,), (1,)), ((), ())),
                    preferred_element_type=jnp.float32) * ATTN_SCALE
                s = s + m_b                                        # broadcast mask
                s = s - jnp.max(s, axis=-1, keepdims=True)
                p = jnp.exp(s)
                p = p * pl.reciprocal(jnp.sum(p, axis=-1, keepdims=True),
                                      approx=True)
                head_ctx.append(jnp.dot(p, v_bh,
                                        preferred_element_type=jnp.float32))
            ctx_rows.append(jnp.concatenate(head_ctx, axis=1))     # [S, H]
        ctx = jnp.concatenate(ctx_rows, axis=0)                    # [B*S, H]

        # ---- attn output projection + residual + LN (fused epilogue) --------
        attn_out = jnp.dot(ctx, aow_ref[l],
                           preferred_element_type=jnp.float32) + aob_ref[l]
        x = layernorm(attn_out + x, alg_ref[l], alb_ref[l])

        # ---- FFN: GELU intermediate, output projection + residual + LN ------
        # TODO(synk): HF BERT uses exact (erf) GELU; tanh approximation here.
        inter = jnp.dot(x, iw_ref[l],
                        preferred_element_type=jnp.float32) + ib_ref[l]
        inter = jax.nn.gelu(inter, approximate=True)
        ffn_out = jnp.dot(inter, ow_ref[l],
                          preferred_element_type=jnp.float32) + ob_ref[l]
        x = layernorm(ffn_out + x, olg_ref[l], olb_ref[l])

    # ---- pooler: tanh(W_p @ hidden[:, 0] + b_p), all CLS rows in one dot ----
    cls = jnp.concatenate([x[b * S:b * S + 1, :] for b in range(B)], axis=0)
    out_ref[...] = jnp.tanh(
        jnp.dot(cls, pw_ref[...], preferred_element_type=jnp.float32)
        + pb_ref[...])


# ------------------------------ parameter init -------------------------------
def init_params(key):
    def dense(k, fan_in, fan_out):
        return jax.random.normal(k, (fan_in, fan_out), jnp.float32) * 0.02

    H, I, L = HIDDEN, INTERMEDIATE, NUM_LAYERS
    keys = jax.random.split(key, 4 + L)
    params = {
        "word_emb": jax.random.normal(keys[0], (VOCAB, H), jnp.float32) * 0.02,
        "pos_emb": jax.random.normal(keys[1], (MAX_POS, H), jnp.float32) * 0.02,
        "type_emb": jax.random.normal(keys[2], (2, H), jnp.float32) * 0.02,
        "emb_ln_g": jnp.ones((1, H), jnp.float32),
        "emb_ln_b": jnp.zeros((1, H), jnp.float32),
        "pooler_w": dense(keys[3], H, H),
        "pooler_b": jnp.zeros((1, H), jnp.float32),
    }
    qkv_w, ao_w, i_w, o_w = [], [], [], []
    for li in range(L):
        lk = jax.random.split(keys[4 + li], 6)
        qkv_w.append(jnp.concatenate(
            [dense(lk[0], H, H), dense(lk[1], H, H), dense(lk[2], H, H)], axis=1))
        ao_w.append(dense(lk[3], H, H))
        i_w.append(dense(lk[4], H, I))
        o_w.append(dense(lk[5], I, H))
    params.update({
        "qkv_w": jnp.stack(qkv_w),                   # [L, H, 3H]
        "qkv_b": jnp.zeros((L, 1, 3 * H), jnp.float32),
        "ao_w": jnp.stack(ao_w),                     # [L, H, H]
        "ao_b": jnp.zeros((L, 1, H), jnp.float32),
        "attn_ln_g": jnp.ones((L, 1, H), jnp.float32),
        "attn_ln_b": jnp.zeros((L, 1, H), jnp.float32),
        "i_w": jnp.stack(i_w),                       # [L, H, I]
        "i_b": jnp.zeros((L, 1, I), jnp.float32),
        "o_w": jnp.stack(o_w),                       # [L, I, H]
        "o_b": jnp.zeros((L, 1, H), jnp.float32),
        "out_ln_g": jnp.ones((L, 1, H), jnp.float32),
        "out_ln_b": jnp.zeros((L, 1, H), jnp.float32),
    })
    return params


# ------------------------------ forward pass ---------------------------------
def bert_linear_txt_forward(params, txt_ids, mask):
    """Returns pooled output == BERT forward()[1], shape [B, H]."""
    B, S = txt_ids.shape
    # Embedding lookup (glue): word + position + token_type(0).
    x_emb = (params["word_emb"][txt_ids]
             + params["pos_emb"][:S][None, :, :]
             + params["type_emb"][0][None, None, :]).reshape(B * S, HIDDEN)
    # BERT-style additive attention mask: 0 where attended, -1e4 where masked.
    add_mask = (1.0 - mask.astype(jnp.float32)) * -10000.0          # [B, S]

    return pl.pallas_call(
        _bert_fused_kernel,
        out_shape=jax.ShapeDtypeStruct((B, HIDDEN), jnp.float32),
    )(
        x_emb, add_mask,
        params["emb_ln_g"], params["emb_ln_b"],
        params["qkv_w"], params["qkv_b"],
        params["ao_w"], params["ao_b"], params["attn_ln_g"], params["attn_ln_b"],
        params["i_w"], params["i_b"], params["o_w"], params["o_b"],
        params["out_ln_g"], params["out_ln_b"],
        params["pooler_w"], params["pooler_b"],
    )


# ---------------------------------- main -------------------------------------
if __name__ == "__main__":
    key = jax.random.PRNGKey(0)
    pkey, ikey = jax.random.split(key)
    params = init_params(pkey)

    txt = jax.random.randint(ikey, (BATCH, SEQ), 0, VOCAB, dtype=jnp.int32)
    mask = jnp.ones((BATCH, SEQ), jnp.int32)
    mask = mask.at[1, SEQ - 2:].set(0)             # pad out last two tokens of row 1

    fwd = jax.jit(bert_linear_txt_forward)
    pooled = jax.block_until_ready(fwd(params, txt, mask))
    assert pooled.shape == (BATCH, HIDDEN)
    assert bool(jnp.all(jnp.isfinite(pooled)))
    print("KERNEL_OK")
</pallas_src>

<mosaic_0001>
module attributes {stable_mosaic.version = 11 : i64} {
  func.func @_bert_fused_kernel(%arg0: memref<16x32xf32, #tpu.memory_space<vmem>>, %arg1: memref<2x8xf32, #tpu.memory_space<vmem>>, %arg2: memref<1x32xf32, #tpu.memory_space<vmem>>, %arg3: memref<1x32xf32, #tpu.memory_space<vmem>>, %arg4: memref<2x32x96xf32, #tpu.memory_space<vmem>>, %arg5: memref<2x1x96xf32, #tpu.memory_space<vmem>>, %arg6: memref<2x32x32xf32, #tpu.memory_space<vmem>>, %arg7: memref<2x1x32xf32, #tpu.memory_space<vmem>>, %arg8: memref<2x1x32xf32, #tpu.memory_space<vmem>>, %arg9: memref<2x1x32xf32, #tpu.memory_space<vmem>>, %arg10: memref<2x32x64xf32, #tpu.memory_space<vmem>>, %arg11: memref<2x1x64xf32, #tpu.memory_space<vmem>>, %arg12: memref<2x64x32xf32, #tpu.memory_space<vmem>>, %arg13: memref<2x1x32xf32, #tpu.memory_space<vmem>>, %arg14: memref<2x1x32xf32, #tpu.memory_space<vmem>>, %arg15: memref<2x1x32xf32, #tpu.memory_space<vmem>>, %arg16: memref<32x32xf32, #tpu.memory_space<vmem>>, %arg17: memref<1x32xf32, #tpu.memory_space<vmem>>, %arg18: memref<2x32xf32, #tpu.memory_space<vmem>>) attributes {dimension_semantics = [], scalar_prefetch = 0 : i64, scratch_operands = 0 : i64, tpu.core_type = #tpu.core_type<tc>} {
    %c0 = arith.constant 0 : index
    %c0_0 = arith.constant 0 : index
    %0 = vector.load %arg0[%c0, %c0_0] : memref<16x32xf32, #tpu.memory_space<vmem>>, vector<16x32xf32>
    %c0_1 = arith.constant 0 : index
    %c0_2 = arith.constant 0 : index
    %1 = vector.load %arg2[%c0_1, %c0_2] : memref<1x32xf32, #tpu.memory_space<vmem>>, vector<1x32xf32>
    %c0_3 = arith.constant 0 : index
    %c0_4 = arith.constant 0 : index
    %2 = vector.load %arg3[%c0_3, %c0_4] : memref<1x32xf32, #tpu.memory_space<vmem>>, vector<1x32xf32>
    %cst = arith.constant dense<0.000000e+00> : vector<16xf32>
    %3 = vector.multi_reduction <add>, %0, %cst [1] : vector<16x32xf32> to vector<16xf32>
    %4 = vector.shape_cast %3 : vector<16xf32> to vector<16x1xf32>
    %cst_5 = arith.constant 3.200000e+01 : f32
    %5 = vector.broadcast %cst_5 : f32 to vector<16x1xf32>
    %6 = arith.divf %4, %5 : vector<16x1xf32>
    %7 = vector.broadcast %6 : vector<16x1xf32> to vector<16x32xf32>
    %8 = arith.subf %0, %7 : vector<16x32xf32>
    %9 = arith.mulf %8, %8 : vector<16x32xf32>
    %cst_6 = arith.constant dense<0.000000e+00> : vector<16xf32>
    %10 = vector.multi_reduction <add>, %9, %cst_6 [1] : vector<16x32xf32> to vector<16xf32>
    %11 = vector.shape_cast %10 : vector<16xf32> to vector<16x1xf32>
    %cst_7 = arith.constant 3.200000e+01 : f32
    %12 = vector.broadcast %cst_7 : f32 to vector<16x1xf32>
    %13 = arith.divf %11, %12 : vector<16x1xf32>
    %14 = vector.broadcast %6 : vector<16x1xf32> to vector<16x32xf32>
    %15 = arith.subf %0, %14 : vector<16x32xf32>
    %cst_8 = arith.constant 9.99999996E-13 : f32
    %16 = vector.broadcast %cst_8 : f32 to vector<16x1xf32>
    %17 = arith.addf %13, %16 : vector<16x1xf32>
    %18 = math.rsqrt %17 : vector<16x1xf32>
    %19 = vector.broadcast %18 : vector<16x1xf32> to vector<16x32xf32>
    %20 = arith.mulf %15, %19 : vector<16x32xf32>
    %21 = vector.broadcast %1 : vector<1x32xf32> to vector<16x32xf32>
    %22 = arith.mulf %20, %21 : vector<16x32xf32>
    %23 = vector.broadcast %2 : vector<1x32xf32> to vector<16x32xf32>
    %24 = arith.addf %22, %23 : vector<16x32xf32>
    %c0_9 = arith.constant 0 : index
    %c0_10 = arith.constant 0 : index
    %25 = vector.load %arg1[%c0_9, %c0_10] : memref<2x8xf32, #tpu.memory_space<vmem>>, vector<2x8xf32>
    %c0_11 = arith.constant 0 : index
    %c0_12 = arith.constant 0 : index
    %c0_13 = arith.constant 0 : index
    %26 = vector.load %arg4[%c0_11, %c0_12, %c0_13] : memref<2x32x96xf32, #tpu.memory_space<vmem>>, vector<1x32x96xf32>
    %27 = vector.shape_cast %26 : vector<1x32x96xf32> to vector<32x96xf32>
    %cst_14 = arith.constant dense<0.000000e+00> : vector<16x96xf32>
    %28 = tpu.matmul %24, %27, %cst_14 {dimension_numbers = #tpu.dot_dimension_numbers<[1], [0], [0], [1], [0, 0, 1, 1], [], []>} : vector<16x32xf32>, vector<32x96xf32>, vector<16x96xf32> -> vector<16x96xf32>
    %c0_15 = arith.constant 0 : index
    %c0_16 = arith.constant 0 : index
    %c0_17 = arith.constant 0 : index
    %29 = vector.load %arg5[%c0_15, %c0_16, %c0_17] : memref<2x1x96xf32, #tpu.memory_space<vmem>>, vector<1x1x96xf32>
    %30 = vector.shape_cast %29 : vector<1x1x96xf32> to vector<1x96xf32>
    %31 = vector.broadcast %30 : vector<1x96xf32> to vector<16x96xf32>
    %32 = arith.addf %28, %31 : vector<16x96xf32>
    %33 = vector.extract_strided_slice %25 {offsets = [0, 0], sizes = [1, 8], strides = [1, 1]} : vector<2x8xf32> to vector<1x8xf32>
    %34 = vector.extract_strided_slice %32 {offsets = [0, 0], sizes = [8, 16], strides = [1, 1]} : vector<16x96xf32> to vector<8x16xf32>
    %35 = vector.extract_strided_slice %32 {offsets = [0, 32], sizes = [8, 16], strides = [1, 1]} : vector<16x96xf32> to vector<8x16xf32>
    %36 = vector.extract_strided_slice %32 {offsets = [0, 64], sizes = [8, 16], strides = [1, 1]} : vector<16x96xf32> to vector<8x16xf32>
    %cst_18 = arith.constant dense<0.000000e+00> : vector<8x8xf32>
    %37 = tpu.matmul %34, %35, %cst_18 {dimension_numbers = #tpu.dot_dimension_numbers<[1], [1], [0], [0], [0, 0, 1, 0], [], []>} : vector<8x16xf32>, vector<8x16xf32>, vector<8x8xf32> -> vector<8x8xf32>
    %cst_19 = arith.constant 2.500000e-01 : f32
    %38 = vector.broadcast %cst_19 : f32 to vector<8x8xf32>
    %39 = arith.mulf %37, %38 : vector<8x8xf32>
    %40 = vector.broadcast %33 : vector<1x8xf32> to vector<8x8xf32>
    %41 = arith.addf %39, %40 : vector<8x8xf32>
    %cst_20 = arith.constant dense<0xFF800000> : vector<8xf32>
    %42 = vector.multi_reduction <maximumf>, %41, %cst_20 [1] : vector<8x8xf32> to vector<8xf32>
    %43 = vector.shape_cast %42 : vector<8xf32> to vector<8x1xf32>
    %44 = vector.broadcast %43 : vector<8x1xf32> to vector<8x8xf32>
    %45 = arith.subf %41, %44 : vector<8x8xf32>
    %46 = math.exp %45 : vector<8x8xf32>
    %cst_21 = arith.constant dense<0.000000e+00> : vector<8xf32>
    %47 = vector.multi_reduction <add>, %46, %cst_21 [1] : vector<8x8xf32> to vector<8xf32>
    %48 = vector.shape_cast %47 : vector<8xf32> to vector<8x1xf32>
    %49 = tpu.reciprocal %48 {approx = true} : vector<8x1xf32> -> vector<8x1xf32>
    %50 = vector.broadcast %49 : vector<8x1xf32> to vector<8x8xf32>
    %51 = arith.mulf %46, %50 : vector<8x8xf32>
    %cst_22 = arith.constant dense<0.000000e+00> : vector<8x16xf32>
    %52 = tpu.matmul %51, %36, %cst_22 {dimension_numbers = #tpu.dot_dimension_numbers<[1], [0], [0], [1], [0, 0, 1, 1], [], []>} : vector<8x8xf32>, vector<8x16xf32>, vector<8x16xf32> -> vector<8x16xf32>
    %53 = vector.extract_strided_slice %32 {offsets = [0, 16], sizes = [8, 16], strides = [1, 1]} : vector<16x96xf32> to vector<8x16xf32>
    %54 = vector.extract_strided_slice %32 {offsets = [0, 48], sizes = [8, 16], strides = [1, 1]} : vector<16x96xf32> to vector<8x16xf32>
    %55 = vector.extract_strided_slice %32 {offsets = [0, 80], sizes = [8, 16], strides = [1, 1]} : vector<16x96xf32> to vector<8x16xf32>
    %cst_23 = arith.constant dense<0.000000e+00> : vector<8x8xf32>
    %56 = tpu.matmul %53, %54, %cst_23 {dimension_numbers = #tpu.dot_dimension_numbers<[1], [1], [0], [0], [0, 0, 1, 0], [], []>} : vector<8x16xf32>, vector<8x16xf32>, vector<8x8xf32> -> vector<8x8xf32>
    %cst_24 = arith.constant 2.500000e-01 : f32
    %57 = vector.broadcast %cst_24 : f32 to vector<8x8xf32>
    %58 = arith.mulf %56, %57 : vector<8x8xf32>
    %59 = vector.broadcast %33 : vector<1x8xf32> to vector<8x8xf32>
    %60 = arith.addf %58, %59 : vector<8x8xf32>
    %cst_25 = arith.constant dense<0xFF800000> : vector<8xf32>
    %61 = vector.multi_reduction <maximumf>, %60, %cst_25 [1] : vector<8x8xf32> to vector<8xf32>
    %62 = vector.shape_cast %61 : vector<8xf32> to vector<8x1xf32>
    %63 = vector.broadcast %62 : vector<8x1xf32> to vector<8x8xf32>
    %64 = arith.subf %60, %63 : vector<8x8xf32>
    %65 = math.exp %64 : vector<8x8xf32>
    %cst_26 = arith.constant dense<0.000000e+00> : vector<8xf32>
    %66 = vector.multi_reduction <add>, %65, %cst_26 [1] : vector<8x8xf32> to vector<8xf32>
    %67 = vector.shape_cast %66 : vector<8xf32> to vector<8x1xf32>
    %68 = tpu.reciprocal %67 {approx = true} : vector<8x1xf32> -> vector<8x1xf32>
    %69 = vector.broadcast %68 : vector<8x1xf32> to vector<8x8xf32>
    %70 = arith.mulf %65, %69 : vector<8x8xf32>
    %cst_27 = arith.constant dense<0.000000e+00> : vector<8x16xf32>
    %71 = tpu.matmul %70, %55, %cst_27 {dimension_numbers = #tpu.dot_dimension_numbers<[1], [0], [0], [1], [0, 0, 1, 1], [], []>} : vector<8x8xf32>, vector<8x16xf32>, vector<8x16xf32> -> vector<8x16xf32>
    %72 = tpu.concatenate %52, %71 in 1 : vector<8x16xf32>, vector<8x16xf32> -> vector<8x32xf32>
    %73 = vector.extract_strided_slice %25 {offsets = [1, 0], sizes = [1, 8], strides = [1, 1]} : vector<2x8xf32> to vector<1x8xf32>
    %74 = vector.extract_strided_slice %32 {offsets = [8, 0], sizes = [8, 16], strides = [1, 1]} : vector<16x96xf32> to vector<8x16xf32>
    %75 = vector.extract_strided_slice %32 {offsets = [8, 32], sizes = [8, 16], strides = [1, 1]} : vector<16x96xf32> to vector<8x16xf32>
    %76 = vector.extract_strided_slice %32 {offsets = [8, 64], sizes = [8, 16], strides = [1, 1]} : vector<16x96xf32> to vector<8x16xf32>
    %cst_28 = arith.constant dense<0.000000e+00> : vector<8x8xf32>
    %77 = tpu.matmul %74, %75, %cst_28 {dimension_numbers = #tpu.dot_dimension_numbers<[1], [1], [0], [0], [0, 0, 1, 0], [], []>} : vector<8x16xf32>, vector<8x16xf32>, vector<8x8xf32> -> vector<8x8xf32>
    %cst_29 = arith.constant 2.500000e-01 : f32
    %78 = vector.broadcast %cst_29 : f32 to vector<8x8xf32>
    %79 = arith.mulf %77, %78 : vector<8x8xf32>
    %80 = vector.broadcast %73 : vector<1x8xf32> to vector<8x8xf32>
    %81 = arith.addf %79, %80 : vector<8x8xf32>
    %cst_30 = arith.constant dense<0xFF800000> : vector<8xf32>
    %82 = vector.multi_reduction <maximumf>, %81, %cst_30 [1] : vector<8x8xf32> to vector<8xf32>
    %83 = vector.shape_cast %82 : vector<8xf32> to vector<8x1xf32>
    %84 = vector.broadcast %83 : vector<8x1xf32> to vector<8x8xf32>
    %85 = arith.subf %81, %84 : vector<8x8xf32>
    %86 = math.exp %85 : vector<8x8xf32>
    %cst_31 = arith.constant dense<0.000000e+00> : vector<8xf32>
    %87 = vector.multi_reduction <add>, %86, %cst_31 [1] : vector<8x8xf32> to vector<8xf32>
    %88 = vector.shape_cast %87 : vector<8xf32> to vector<8x1xf32>
    %89 = tpu.reciprocal %88 {approx = true} : vector<8x1xf32> -> vector<8x1xf32>
    %90 = vector.broadcast %89 : vector<8x1xf32> to vector<8x8xf32>
    %91 = arith.mulf %86, %90 : vector<8x8xf32>
    %cst_32 = arith.constant dense<0.000000e+00> : vector<8x16xf32>
    %92 = tpu.matmul %91, %76, %cst_32 {dimension_numbers = #tpu.dot_dimension_numbers<[1], [0], [0], [1], [0, 0, 1, 1], [], []>} : vector<8x8xf32>, vector<8x16xf32>, vector<8x16xf32> -> vector<8x16xf32>
    %93 = vector.extract_strided_slice %32 {offsets = [8, 16], sizes = [8, 16], strides = [1, 1]} : vector<16x96xf32> to vector<8x16xf32>
    %94 = vector.extract_strided_slice %32 {offsets = [8, 48], sizes = [8, 16], strides = [1, 1]} : vector<16x96xf32> to vector<8x16xf32>
    %95 = vector.extract_strided_slice %32 {offsets = [8, 80], sizes = [8, 16], strides = [1, 1]} : vector<16x96xf32> to vector<8x16xf32>
    %cst_33 = arith.constant dense<0.000000e+00> : vector<8x8xf32>
    %96 = tpu.matmul %93, %94, %cst_33 {dimension_numbers = #tpu.dot_dimension_numbers<[1], [1], [0], [0], [0, 0, 1, 0], [], []>} : vector<8x16xf32>, vector<8x16xf32>, vector<8x8xf32> -> vector<8x8xf32>
    %cst_34 = arith.constant 2.500000e-01 : f32
    %97 = vector.broadcast %cst_34 : f32 to vector<8x8xf32>
    %98 = arith.mulf %96, %97 : vector<8x8xf32>
    %99 = vector.broadcast %73 : vector<1x8xf32> to vector<8x8xf32>
    %100 = arith.addf %98, %99 : vector<8x8xf32>
    %cst_35 = arith.constant dense<0xFF800000> : vector<8xf32>
    %101 = vector.multi_reduction <maximumf>, %100, %cst_35 [1] : vector<8x8xf32> to vector<8xf32>
    %102 = vector.shape_cast %101 : vector<8xf32> to vector<8x1xf32>
    %103 = vector.broadcast %102 : vector<8x1xf32> to vector<8x8xf32>
    %104 = arith.subf %100, %103 : vector<8x8xf32>
    %105 = math.exp %104 : vector<8x8xf32>
    %cst_36 = arith.constant dense<0.000000e+00> : vector<8xf32>
    %106 = vector.multi_reduction <add>, %105, %cst_36 [1] : vector<8x8xf32> to vector<8xf32>
    %107 = vector.shape_cast %106 : vector<8xf32> to vector<8x1xf32>
    %108 = tpu.reciprocal %107 {approx = true} : vector<8x1xf32> -> vector<8x1xf32>
    %109 = vector.broadcast %108 : vector<8x1xf32> to vector<8x8xf32>
    %110 = arith.mulf %105, %109 : vector<8x8xf32>
    %cst_37 = arith.constant dense<0.000000e+00> : vector<8x16xf32>
    %111 = tpu.matmul %110, %95, %cst_37 {dimension_numbers = #tpu.dot_dimension_numbers<[1], [0], [0], [1], [0, 0, 1, 1], [], []>} : vector<8x8xf32>, vector<8x16xf32>, vector<8x16xf32> -> vector<8x16xf32>
    %112 = tpu.concatenate %92, %111 in 1 : vector<8x16xf32>, vector<8x16xf32> -> vector<8x32xf32>
    %113 = tpu.concatenate %72, %112 in 0 : vector<8x32xf32>, vector<8x32xf32> -> vector<16x32xf32>
    %c0_38 = arith.constant 0 : index
    %c0_39 = arith.constant 0 : index
    %c0_40 = arith.constant 0 : index
    %114 = vector.load %arg6[%c0_38, %c0_39, %c0_40] : memref<2x32x32xf32, #tpu.memory_space<vmem>>, vector<1x32x32xf32>
    %115 = vector.shape_cast %114 : vector<1x32x32xf32> to vector<32x32xf32>
    %cst_41 = arith.constant dense<0.000000e+00> : vector<16x32xf32>
    %116 = tpu.matmul %113, %115, %cst_41 {dimension_numbers = #tpu.dot_dimension_numbers<[1], [0], [0], [1], [0, 0, 1, 1], [], []>} : vector<16x32xf32>, vector<32x32xf32>, vector<16x32xf32> -> vector<16x32xf32>
    %c0_42 = arith.constant 0 : index
    %c0_43 = arith.constant 0 : index
    %c0_44 = arith.constant 0 : index
    %117 = vector.load %arg7[%c0_42, %c0_43, %c0_44] : memref<2x1x32xf32, #tpu.memory_space<vmem>>, vector<1x1x32xf32>
    %118 = vector.shape_cast %117 : vector<1x1x32xf32> to vector<1x32xf32>
    %119 = vector.broadcast %118 : vector<1x32xf32> to vector<16x32xf32>
    %120 = arith.addf %116, %119 : vector<16x32xf32>
    %121 = arith.addf %120, %24 : vector<16x32xf32>
    %c0_45 = arith.constant 0 : index
    %c0_46 = arith.constant 0 : index
    %c0_47 = arith.constant 0 : index
    %122 = vector.load %arg8[%c0_45, %c0_46, %c0_47] : memref<2x1x32xf32, #tpu.memory_space<vmem>>, vector<1x1x32xf32>
    %123 = vector.shape_cast %122 : vector<1x1x32xf32> to vector<1x32xf32>
    %c0_48 = arith.constant 0 : index
    %c0_49 = arith.constant 0 : index
    %c0_50 = arith.constant 0 : index
    %124 = vector.load %arg9[%c0_48, %c0_49, %c0_50] : memref<2x1x32xf32, #tpu.memory_space<vmem>>, vector<1x1x32xf32>
    %125 = vector.shape_cast %124 : vector<1x1x32xf32> to vector<1x32xf32>
    %cst_51 = arith.constant dense<0.000000e+00> : vector<16xf32>
    %126 = vector.multi_reduction <add>, %121, %cst_51 [1] : vector<16x32xf32> to vector<16xf32>
    %127 = vector.shape_cast %126 : vector<16xf32> to vector<16x1xf32>
    %cst_52 = arith.constant 3.200000e+01 : f32
    %128 = vector.broadcast %cst_52 : f32 to vector<16x1xf32>
    %129 = arith.divf %127, %128 : vector<16x1xf32>
    %130 = vector.broadcast %129 : vector<16x1xf32> to vector<16x32xf32>
    %131 = arith.subf %121, %130 : vector<16x32xf32>
    %132 = arith.mulf %131, %131 : vector<16x32xf32>
    %cst_53 = arith.constant dense<0.000000e+00> : vector<16xf32>
    %133 = vector.multi_reduction <add>, %132, %cst_53 [1] : vector<16x32xf32> to vector<16xf32>
    %134 = vector.shape_cast %133 : vector<16xf32> to vector<16x1xf32>
    %cst_54 = arith.constant 3.200000e+01 : f32
    %135 = vector.broadcast %cst_54 : f32 to vector<16x1xf32>
    %136 = arith.divf %134, %135 : vector<16x1xf32>
    %137 = vector.broadcast %129 : vector<16x1xf32> to vector<16x32xf32>
    %138 = arith.subf %121, %137 : vector<16x32xf32>
    %cst_55 = arith.constant 9.99999996E-13 : f32
    %139 = vector.broadcast %cst_55 : f32 to vector<16x1xf32>
    %140 = arith.addf %136, %139 : vector<16x1xf32>
    %141 = math.rsqrt %140 : vector<16x1xf32>
    %142 = vector.broadcast %141 : vector<16x1xf32> to vector<16x32xf32>
    %143 = arith.mulf %138, %142 : vector<16x32xf32>
    %144 = vector.broadcast %123 : vector<1x32xf32> to vector<16x32xf32>
    %145 = arith.mulf %143, %144 : vector<16x32xf32>
    %146 = vector.broadcast %125 : vector<1x32xf32> to vector<16x32xf32>
    %147 = arith.addf %145, %146 : vector<16x32xf32>
    %c0_56 = arith.constant 0 : index
    %c0_57 = arith.constant 0 : index
    %c0_58 = arith.constant 0 : index
    %148 = vector.load %arg10[%c0_56, %c0_57, %c0_58] : memref<2x32x64xf32, #tpu.memory_space<vmem>>, vector<1x32x64xf32>
    %149 = vector.shape_cast %148 : vector<1x32x64xf32> to vector<32x64xf32>
    %cst_59 = arith.constant dense<0.000000e+00> : vector<16x64xf32>
    %150 = tpu.matmul %147, %149, %cst_59 {dimension_numbers = #tpu.dot_dimension_numbers<[1], [0], [0], [1], [0, 0, 1, 1], [], []>} : vector<16x32xf32>, vector<32x64xf32>, vector<16x64xf32> -> vector<16x64xf32>
    %c0_60 = arith.constant 0 : index
    %c0_61 = arith.constant 0 : index
    %c0_62 = arith.constant 0 : index
    %151 = vector.load %arg11[%c0_60, %c0_61, %c0_62] : memref<2x1x64xf32, #tpu.memory_space<vmem>>, vector<1x1x64xf32>
    %152 = vector.shape_cast %151 : vector<1x1x64xf32> to vector<1x64xf32>
    %153 = vector.broadcast %152 : vector<1x64xf32> to vector<16x64xf32>
    %154 = arith.addf %150, %153 : vector<16x64xf32>
    %155 = arith.mulf %154, %154 : vector<16x64xf32>
    %156 = arith.mulf %154, %155 : vector<16x64xf32>
    %cst_63 = arith.constant 4.471500e-02 : f32
    %157 = vector.broadcast %cst_63 : f32 to vector<16x64xf32>
    %158 = arith.mulf %157, %156 : vector<16x64xf32>
    %159 = arith.addf %154, %158 : vector<16x64xf32>
    %cst_64 = arith.constant 0.797884583 : f32
    %160 = vector.broadcast %cst_64 : f32 to vector<16x64xf32>
    %161 = arith.mulf %160, %159 : vector<16x64xf32>
    %162 = math.tanh %161 : vector<16x64xf32>
    %cst_65 = arith.constant 1.000000e+00 : f32
    %163 = vector.broadcast %cst_65 : f32 to vector<16x64xf32>
    %164 = arith.addf %163, %162 : vector<16x64xf32>
    %cst_66 = arith.constant 5.000000e-01 : f32
    %165 = vector.broadcast %cst_66 : f32 to vector<16x64xf32>
    %166 = arith.mulf %165, %164 : vector<16x64xf32>
    %167 = arith.mulf %154, %166 : vector<16x64xf32>
    %c0_67 = arith.constant 0 : index
    %c0_68 = arith.constant 0 : index
    %c0_69 = arith.constant 0 : index
    %168 = vector.load %arg12[%c0_67, %c0_68, %c0_69] : memref<2x64x32xf32, #tpu.memory_space<vmem>>, vector<1x64x32xf32>
    %169 = vector.shape_cast %168 : vector<1x64x32xf32> to vector<64x32xf32>
    %cst_70 = arith.constant dense<0.000000e+00> : vector<16x32xf32>
    %170 = tpu.matmul %167, %169, %cst_70 {dimension_numbers = #tpu.dot_dimension_numbers<[1], [0], [0], [1], [0, 0, 1, 1], [], []>} : vector<16x64xf32>, vector<64x32xf32>, vector<16x32xf32> -> vector<16x32xf32>
    %c0_71 = arith.constant 0 : index
    %c0_72 = arith.constant 0 : index
    %c0_73 = arith.constant 0 : index
    %171 = vector.load %arg13[%c0_71, %c0_72, %c0_73] : memref<2x1x32xf32, #tpu.memory_space<vmem>>, vector<1x1x32xf32>
    %172 = vector.shape_cast %171 : vector<1x1x32xf32> to vector<1x32xf32>
    %173 = vector.broadcast %172 : vector<1x32xf32> to vector<16x32xf32>
    %174 = arith.addf %170, %173 : vector<16x32xf32>
    %175 = arith.addf %174, %147 : vector<16x32xf32>
    %c0_74 = arith.constant 0 : index
    %c0_75 = arith.constant 0 : index
    %c0_76 = arith.constant 0 : index
    %176 = vector.load %arg14[%c0_74, %c0_75, %c0_76] : memref<2x1x32xf32, #tpu.memory_space<vmem>>, vector<1x1x32xf32>
    %177 = vector.shape_cast %176 : vector<1x1x32xf32> to vector<1x32xf32>
    %c0_77 = arith.constant 0 : index
    %c0_78 = arith.constant 0 : index
    %c0_79 = arith.constant 0 : index
    %178 = vector.load %arg15[%c0_77, %c0_78, %c0_79] : memref<2x1x32xf32, #tpu.memory_space<vmem>>, vector<1x1x32xf32>
    %179 = vector.shape_cast %178 : vector<1x1x32xf32> to vector<1x32xf32>
    %cst_80 = arith.constant dense<0.000000e+00> : vector<16xf32>
    %180 = vector.multi_reduction <add>, %175, %cst_80 [1] : vector<16x32xf32> to vector<16xf32>
    %181 = vector.shape_cast %180 : vector<16xf32> to vector<16x1xf32>
    %cst_81 = arith.constant 3.200000e+01 : f32
    %182 = vector.broadcast %cst_81 : f32 to vector<16x1xf32>
    %183 = arith.divf %181, %182 : vector<16x1xf32>
    %184 = vector.broadcast %183 : vector<16x1xf32> to vector<16x32xf32>
    %185 = arith.subf %175, %184 : vector<16x32xf32>
    %186 = arith.mulf %185, %185 : vector<16x32xf32>
    %cst_82 = arith.constant dense<0.000000e+00> : vector<16xf32>
    %187 = vector.multi_reduction <add>, %186, %cst_82 [1] : vector<16x32xf32> to vector<16xf32>
    %188 = vector.shape_cast %187 : vector<16xf32> to vector<16x1xf32>
    %cst_83 = arith.constant 3.200000e+01 : f32
    %189 = vector.broadcast %cst_83 : f32 to vector<16x1xf32>
    %190 = arith.divf %188, %189 : vector<16x1xf32>
    %191 = vector.broadcast %183 : vector<16x1xf32> to vector<16x32xf32>
    %192 = arith.subf %175, %191 : vector<16x32xf32>
    %cst_84 = arith.constant 9.99999996E-13 : f32
    %193 = vector.broadcast %cst_84 : f32 to vector<16x1xf32>
    %194 = arith.addf %190, %193 : vector<16x1xf32>
    %195 = math.rsqrt %194 : vector<16x1xf32>
    %196 = vector.broadcast %195 : vector<16x1xf32> to vector<16x32xf32>
    %197 = arith.mulf %192, %196 : vector<16x32xf32>
    %198 = vector.broadcast %177 : vector<1x32xf32> to vector<16x32xf32>
    %199 = arith.mulf %197, %198 : vector<16x32xf32>
    %200 = vector.broadcast %179 : vector<1x32xf32> to vector<16x32xf32>
    %201 = arith.addf %199, %200 : vector<16x32xf32>
    %c1 = arith.constant 1 : index
    %c0_85 = arith.constant 0 : index
    %c0_86 = arith.constant 0 : index
    %202 = vector.load %arg4[%c1, %c0_85, %c0_86] : memref<2x32x96xf32, #tpu.memory_space<vmem>>, vector<1x32x96xf32>
    %203 = vector.shape_cast %202 : vector<1x32x96xf32> to vector<32x96xf32>
    %cst_87 = arith.constant dense<0.000000e+00> : vector<16x96xf32>
    %204 = tpu.matmul %201, %203, %cst_87 {dimension_numbers = #tpu.dot_dimension_numbers<[1], [0], [0], [1], [0, 0, 1, 1], [], []>} : vector<16x32xf32>, vector<32x96xf32>, vector<16x96xf32> -> vector<16x96xf32>
    %c1_88 = arith.constant 1 : index
    %c0_89 = arith.constant 0 : index
    %c0_90 = arith.constant 0 : index
    %205 = vector.load %arg5[%c1_88, %c0_89, %c0_90] : memref<2x1x96xf32, #tpu.memory_space<vmem>>, vector<1x1x96xf32>
    %206 = vector.shape_cast %205 : vector<1x1x96xf32> to vector<1x96xf32>
    %207 = vector.broadcast %206 : vector<1x96xf32> to vector<16x96xf32>
    %208 = arith.addf %204, %207 : vector<16x96xf32>
    %209 = vector.extract_strided_slice %25 {offsets = [0, 0], sizes = [1, 8], strides = [1, 1]} : vector<2x8xf32> to vector<1x8xf32>
    %210 = vector.extract_strided_slice %208 {offsets = [0, 0], sizes = [8, 16], strides = [1, 1]} : vector<16x96xf32> to vector<8x16xf32>
    %211 = vector.extract_strided_slice %208 {offsets = [0, 32], sizes = [8, 16], strides = [1, 1]} : vector<16x96xf32> to vector<8x16xf32>
    %212 = vector.extract_strided_slice %208 {offsets = [0, 64], sizes = [8, 16], strides = [1, 1]} : vector<16x96xf32> to vector<8x16xf32>
    %cst_91 = arith.constant dense<0.000000e+00> : vector<8x8xf32>
    %213 = tpu.matmul %210, %211, %cst_91 {dimension_numbers = #tpu.dot_dimension_numbers<[1], [1], [0], [0], [0, 0, 1, 0], [], []>} : vector<8x16xf32>, vector<8x16xf32>, vector<8x8xf32> -> vector<8x8xf32>
    %cst_92 = arith.constant 2.500000e-01 : f32
    %214 = vector.broadcast %cst_92 : f32 to vector<8x8xf32>
    %215 = arith.mulf %213, %214 : vector<8x8xf32>
    %216 = vector.broadcast %209 : vector<1x8xf32> to vector<8x8xf32>
    %217 = arith.addf %215, %216 : vector<8x8xf32>
    %cst_93 = arith.constant dense<0xFF800000> : vector<8xf32>
    %218 = vector.multi_reduction <maximumf>, %217, %cst_93 [1] : vector<8x8xf32> to vector<8xf32>
    %219 = vector.shape_cast %218 : vector<8xf32> to vector<8x1xf32>
    %220 = vector.broadcast %219 : vector<8x1xf32> to vector<8x8xf32>
    %221 = arith.subf %217, %220 : vector<8x8xf32>
    %222 = math.exp %221 : vector<8x8xf32>
    %cst_94 = arith.constant dense<0.000000e+00> : vector<8xf32>
    %223 = vector.multi_reduction <add>, %222, %cst_94 [1] : vector<8x8xf32> to vector<8xf32>
    %224 = vector.shape_cast %223 : vector<8xf32> to vector<8x1xf32>
    %225 = tpu.reciprocal %224 {approx = true} : vector<8x1xf32> -> vector<8x1xf32>
    %226 = vector.broadcast %225 : vector<8x1xf32> to vector<8x8xf32>
    %227 = arith.mulf %222, %226 : vector<8x8xf32>
    %cst_95 = arith.constant dense<0.000000e+00> : vector<8x16xf32>
    %228 = tpu.matmul %227, %212, %cst_95 {dimension_numbers = #tpu.dot_dimension_numbers<[1], [0], [0], [1], [0, 0, 1, 1], [], []>} : vector<8x8xf32>, vector<8x16xf32>, vector<8x16xf32> -> vector<8x16xf32>
    %229 = vector.extract_strided_slice %208 {offsets = [0, 16], sizes = [8, 16], strides = [1, 1]} : vector<16x96xf32> to vector<8x16xf32>
    %230 = vector.extract_strided_slice %208 {offsets = [0, 48], sizes = [8, 16], strides = [1, 1]} : vector<16x96xf32> to vector<8x16xf32>
    %231 = vector.extract_strided_slice %208 {offsets = [0, 80], sizes = [8, 16], strides = [1, 1]} : vector<16x96xf32> to vector<8x16xf32>
    %cst_96 = arith.constant dense<0.000000e+00> : vector<8x8xf32>
    %232 = tpu.matmul %229, %230, %cst_96 {dimension_numbers = #tpu.dot_dimension_numbers<[1], [1], [0], [0], [0, 0, 1, 0], [], []>} : vector<8x16xf32>, vector<8x16xf32>, vector<8x8xf32> -> vector<8x8xf32>
    %cst_97 = arith.constant 2.500000e-01 : f32
    %233 = vector.broadcast %cst_97 : f32 to vector<8x8xf32>
    %234 = arith.mulf %232, %233 : vector<8x8xf32>
    %235 = vector.broadcast %209 : vector<1x8xf32> to vector<8x8xf32>
    %236 = arith.addf %234, %235 : vector<8x8xf32>
    %cst_98 = arith.constant dense<0xFF800000> : vector<8xf32>
    %237 = vector.multi_reduction <maximumf>, %236, %cst_98 [1] : vector<8x8xf32> to vector<8xf32>
    %238 = vector.shape_cast %237 : vector<8xf32> to vector<8x1xf32>
    %239 = vector.broadcast %238 : vector<8x1xf32> to vector<8x8xf32>
    %240 = arith.subf %236, %239 : vector<8x8xf32>
    %241 = math.exp %240 : vector<8x8xf32>
    %cst_99 = arith.constant dense<0.000000e+00> : vector<8xf32>
    %242 = vector.multi_reduction <add>, %241, %cst_99 [1] : vector<8x8xf32> to vector<8xf32>
    %243 = vector.shape_cast %242 : vector<8xf32> to vector<8x1xf32>
    %244 = tpu.reciprocal %243 {approx = true} : vector<8x1xf32> -> vector<8x1xf32>
    %245 = vector.broadcast %244 : vector<8x1xf32> to vector<8x8xf32>
    %246 = arith.mulf %241, %245 : vector<8x8xf32>
    %cst_100 = arith.constant dense<0.000000e+00> : vector<8x16xf32>
    %247 = tpu.matmul %246, %231, %cst_100 {dimension_numbers = #tpu.dot_dimension_numbers<[1], [0], [0], [1], [0, 0, 1, 1], [], []>} : vector<8x8xf32>, vector<8x16xf32>, vector<8x16xf32> -> vector<8x16xf32>
    %248 = tpu.concatenate %228, %247 in 1 : vector<8x16xf32>, vector<8x16xf32> -> vector<8x32xf32>
    %249 = vector.extract_strided_slice %25 {offsets = [1, 0], sizes = [1, 8], strides = [1, 1]} : vector<2x8xf32> to vector<1x8xf32>
    %250 = vector.extract_strided_slice %208 {offsets = [8, 0], sizes = [8, 16], strides = [1, 1]} : vector<16x96xf32> to vector<8x16xf32>
    %251 = vector.extract_strided_slice %208 {offsets = [8, 32], sizes = [8, 16], strides = [1, 1]} : vector<16x96xf32> to vector<8x16xf32>
    %252 = vector.extract_strided_slice %208 {offsets = [8, 64], sizes = [8, 16], strides = [1, 1]} : vector<16x96xf32> to vector<8x16xf32>
    %cst_101 = arith.constant dense<0.000000e+00> : vector<8x8xf32>
    %253 = tpu.matmul %250, %251, %cst_101 {dimension_numbers = #tpu.dot_dimension_numbers<[1], [1], [0], [0], [0, 0, 1, 0], [], []>} : vector<8x16xf32>, vector<8x16xf32>, vector<8x8xf32> -> vector<8x8xf32>
    %cst_102 = arith.constant 2.500000e-01 : f32
    %254 = vector.broadcast %cst_102 : f32 to vector<8x8xf32>
    %255 = arith.mulf %253, %254 : vector<8x8xf32>
    %256 = vector.broadcast %249 : vector<1x8xf32> to vector<8x8xf32>
    %257 = arith.addf %255, %256 : vector<8x8xf32>
    %cst_103 = arith.constant dense<0xFF800000> : vector<8xf32>
    %258 = vector.multi_reduction <maximumf>, %257, %cst_103 [1] : vector<8x8xf32> to vector<8xf32>
    %259 = vector.shape_cast %258 : vector<8xf32> to vector<8x1xf32>
    %260 = vector.broadcast %259 : vector<8x1xf32> to vector<8x8xf32>
    %261 = arith.subf %257, %260 : vector<8x8xf32>
    %262 = math.exp %261 : vector<8x8xf32>
    %cst_104 = arith.constant dense<0.000000e+00> : vector<8xf32>
    %263 = vector.multi_reduction <add>, %262, %cst_104 [1] : vector<8x8xf32> to vector<8xf32>
    %264 = vector.shape_cast %263 : vector<8xf32> to vector<8x1xf32>
    %265 = tpu.reciprocal %264 {approx = true} : vector<8x1xf32> -> vector<8x1xf32>
    %266 = vector.broadcast %265 : vector<8x1xf32> to vector<8x8xf32>
    %267 = arith.mulf %262, %266 : vector<8x8xf32>
    %cst_105 = arith.constant dense<0.000000e+00> : vector<8x16xf32>
    %268 = tpu.matmul %267, %252, %cst_105 {dimension_numbers = #tpu.dot_dimension_numbers<[1], [0], [0], [1], [0, 0, 1, 1], [], []>} : vector<8x8xf32>, vector<8x16xf32>, vector<8x16xf32> -> vector<8x16xf32>
    %269 = vector.extract_strided_slice %208 {offsets = [8, 16], sizes = [8, 16], strides = [1, 1]} : vector<16x96xf32> to vector<8x16xf32>
    %270 = vector.extract_strided_slice %208 {offsets = [8, 48], sizes = [8, 16], strides = [1, 1]} : vector<16x96xf32> to vector<8x16xf32>
    %271 = vector.extract_strided_slice %208 {offsets = [8, 80], sizes = [8, 16], strides = [1, 1]} : vector<16x96xf32> to vector<8x16xf32>
    %cst_106 = arith.constant dense<0.000000e+00> : vector<8x8xf32>
    %272 = tpu.matmul %269, %270, %cst_106 {dimension_numbers = #tpu.dot_dimension_numbers<[1], [1], [0], [0], [0, 0, 1, 0], [], []>} : vector<8x16xf32>, vector<8x16xf32>, vector<8x8xf32> -> vector<8x8xf32>
    %cst_107 = arith.constant 2.500000e-01 : f32
    %273 = vector.broadcast %cst_107 : f32 to vector<8x8xf32>
    %274 = arith.mulf %272, %273 : vector<8x8xf32>
    %275 = vector.broadcast %249 : vector<1x8xf32> to vector<8x8xf32>
    %276 = arith.addf %274, %275 : vector<8x8xf32>
    %cst_108 = arith.constant dense<0xFF800000> : vector<8xf32>
    %277 = vector.multi_reduction <maximumf>, %276, %cst_108 [1] : vector<8x8xf32> to vector<8xf32>
    %278 = vector.shape_cast %277 : vector<8xf32> to vector<8x1xf32>
    %279 = vector.broadcast %278 : vector<8x1xf32> to vector<8x8xf32>
    %280 = arith.subf %276, %279 : vector<8x8xf32>
    %281 = math.exp %280 : vector<8x8xf32>
    %cst_109 = arith.constant dense<0.000000e+00> : vector<8xf32>
    %282 = vector.multi_reduction <add>, %281, %cst_109 [1] : vector<8x8xf32> to vector<8xf32>
    %283 = vector.shape_cast %282 : vector<8xf32> to vector<8x1xf32>
    %284 = tpu.reciprocal %283 {approx = true} : vector<8x1xf32> -> vector<8x1xf32>
    %285 = vector.broadcast %284 : vector<8x1xf32> to vector<8x8xf32>
    %286 = arith.mulf %281, %285 : vector<8x8xf32>
    %cst_110 = arith.constant dense<0.000000e+00> : vector<8x16xf32>
    %287 = tpu.matmul %286, %271, %cst_110 {dimension_numbers = #tpu.dot_dimension_numbers<[1], [0], [0], [1], [0, 0, 1, 1], [], []>} : vector<8x8xf32>, vector<8x16xf32>, vector<8x16xf32> -> vector<8x16xf32>
    %288 = tpu.concatenate %268, %287 in 1 : vector<8x16xf32>, vector<8x16xf32> -> vector<8x32xf32>
    %289 = tpu.concatenate %248, %288 in 0 : vector<8x32xf32>, vector<8x32xf32> -> vector<16x32xf32>
    %c1_111 = arith.constant 1 : index
    %c0_112 = arith.constant 0 : index
    %c0_113 = arith.constant 0 : index
    %290 = vector.load %arg6[%c1_111, %c0_112, %c0_113] : memref<2x32x32xf32, #tpu.memory_space<vmem>>, vector<1x32x32xf32>
    %291 = vector.shape_cast %290 : vector<1x32x32xf32> to vector<32x32xf32>
    %cst_114 = arith.constant dense<0.000000e+00> : vector<16x32xf32>
    %292 = tpu.matmul %289, %291, %cst_114 {dimension_numbers = #tpu.dot_dimension_numbers<[1], [0], [0], [1], [0, 0, 1, 1], [], []>} : vector<16x32xf32>, vector<32x32xf32>, vector<16x32xf32> -> vector<16x32xf32>
    %c1_115 = arith.constant 1 : index
    %c0_116 = arith.constant 0 : index
    %c0_117 = arith.constant 0 : index
    %293 = vector.load %arg7[%c1_115, %c0_116, %c0_117] : memref<2x1x32xf32, #tpu.memory_space<vmem>>, vector<1x1x32xf32>
    %294 = vector.shape_cast %293 : vector<1x1x32xf32> to vector<1x32xf32>
    %295 = vector.broadcast %294 : vector<1x32xf32> to vector<16x32xf32>
    %296 = arith.addf %292, %295 : vector<16x32xf32>
    %297 = arith.addf %296, %201 : vector<16x32xf32>
    %c1_118 = arith.constant 1 : index
    %c0_119 = arith.constant 0 : index
    %c0_120 = arith.constant 0 : index
    %298 = vector.load %arg8[%c1_118, %c0_119, %c0_120] : memref<2x1x32xf32, #tpu.memory_space<vmem>>, vector<1x1x32xf32>
    %299 = vector.shape_cast %298 : vector<1x1x32xf32> to vector<1x32xf32>
    %c1_121 = arith.constant 1 : index
    %c0_122 = arith.constant 0 : index
    %c0_123 = arith.constant 0 : index
    %300 = vector.load %arg9[%c1_121, %c0_122, %c0_123] : memref<2x1x32xf32, #tpu.memory_space<vmem>>, vector<1x1x32xf32>
    %301 = vector.shape_cast %300 : vector<1x1x32xf32> to vector<1x32xf32>
    %cst_124 = arith.constant dense<0.000000e+00> : vector<16xf32>
    %302 = vector.multi_reduction <add>, %297, %cst_124 [1] : vector<16x32xf32> to vector<16xf32>
    %303 = vector.shape_cast %302 : vector<16xf32> to vector<16x1xf32>
    %cst_125 = arith.constant 3.200000e+01 : f32
    %304 = vector.broadcast %cst_125 : f32 to vector<16x1xf32>
    %305 = arith.divf %303, %304 : vector<16x1xf32>
    %306 = vector.broadcast %305 : vector<16x1xf32> to vector<16x32xf32>
    %307 = arith.subf %297, %306 : vector<16x32xf32>
    %308 = arith.mulf %307, %307 : vector<16x32xf32>
    %cst_126 = arith.constant dense<0.000000e+00> : vector<16xf32>
    %309 = vector.multi_reduction <add>, %308, %cst_126 [1] : vector<16x32xf32> to vector<16xf32>
    %310 = vector.shape_cast %309 : vector<16xf32> to vector<16x1xf32>
    %cst_127 = arith.constant 3.200000e+01 : f32
    %311 = vector.broadcast %cst_127 : f32 to vector<16x1xf32>
    %312 = arith.divf %310, %311 : vector<16x1xf32>
    %313 = vector.broadcast %305 : vector<16x1xf32> to vector<16x32xf32>
    %314 = arith.subf %297, %313 : vector<16x32xf32>
    %cst_128 = arith.constant 9.99999996E-13 : f32
    %315 = vector.broadcast %cst_128 : f32 to vector<16x1xf32>
    %316 = arith.addf %312, %315 : vector<16x1xf32>
    %317 = math.rsqrt %316 : vector<16x1xf32>
    %318 = vector.broadcast %317 : vector<16x1xf32> to vector<16x32xf32>
    %319 = arith.mulf %314, %318 : vector<16x32xf32>
    %320 = vector.broadcast %299 : vector<1x32xf32> to vector<16x32xf32>
    %321 = arith.mulf %319, %320 : vector<16x32xf32>
    %322 = vector.broadcast %301 : vector<1x32xf32> to vector<16x32xf32>
    %323 = arith.addf %321, %322 : vector<16x32xf32>
    %c1_129 = arith.constant 1 : index
    %c0_130 = arith.constant 0 : index
    %c0_131 = arith.constant 0 : index
    %324 = vector.load %arg10[%c1_129, %c0_130, %c0_131] : memref<2x32x64xf32, #tpu.memory_space<vmem>>, vector<1x32x64xf32>
    %325 = vector.shape_cast %324 : vector<1x32x64xf32> to vector<32x64xf32>
    %cst_132 = arith.constant dense<0.000000e+00> : vector<16x64xf32>
    %326 = tpu.matmul %323, %325, %cst_132 {dimension_numbers = #tpu.dot_dimension_numbers<[1], [0], [0], [1], [0, 0, 1, 1], [], []>} : vector<16x32xf32>, vector<32x64xf32>, vector<16x64xf32> -> vector<16x64xf32>
    %c1_133 = arith.constant 1 : index
    %c0_134 = arith.constant 0 : index
    %c0_135 = arith.constant 0 : index
    %327 = vector.load %arg11[%c1_133, %c0_134, %c0_135] : memref<2x1x64xf32, #tpu.memory_space<vmem>>, vector<1x1x64xf32>
    %328 = vector.shape_cast %327 : vector<1x1x64xf32> to vector<1x64xf32>
    %329 = vector.broadcast %328 : vector<1x64xf32> to vector<16x64xf32>
    %330 = arith.addf %326, %329 : vector<16x64xf32>
    %331 = arith.mulf %330, %330 : vector<16x64xf32>
    %332 = arith.mulf %330, %331 : vector<16x64xf32>
    %cst_136 = arith.constant 4.471500e-02 : f32
    %333 = vector.broadcast %cst_136 : f32 to vector<16x64xf32>
    %334 = arith.mulf %333, %332 : vector<16x64xf32>
    %335 = arith.addf %330, %334 : vector<16x64xf32>
    %cst_137 = arith.constant 0.797884583 : f32
    %336 = vector.broadcast %cst_137 : f32 to vector<16x64xf32>
    %337 = arith.mulf %336, %335 : vector<16x64xf32>
    %338 = math.tanh %337 : vector<16x64xf32>
    %cst_138 = arith.constant 1.000000e+00 : f32
    %339 = vector.broadcast %cst_138 : f32 to vector<16x64xf32>
    %340 = arith.addf %339, %338 : vector<16x64xf32>
    %cst_139 = arith.constant 5.000000e-01 : f32
    %341 = vector.broadcast %cst_139 : f32 to vector<16x64xf32>
    %342 = arith.mulf %341, %340 : vector<16x64xf32>
    %343 = arith.mulf %330, %342 : vector<16x64xf32>
    %c1_140 = arith.constant 1 : index
    %c0_141 = arith.constant 0 : index
    %c0_142 = arith.constant 0 : index
    %344 = vector.load %arg12[%c1_140, %c0_141, %c0_142] : memref<2x64x32xf32, #tpu.memory_space<vmem>>, vector<1x64x32xf32>
    %345 = vector.shape_cast %344 : vector<1x64x32xf32> to vector<64x32xf32>
    %cst_143 = arith.constant dense<0.000000e+00> : vector<16x32xf32>
    %346 = tpu.matmul %343, %345, %cst_143 {dimension_numbers = #tpu.dot_dimension_numbers<[1], [0], [0], [1], [0, 0, 1, 1], [], []>} : vector<16x64xf32>, vector<64x32xf32>, vector<16x32xf32> -> vector<16x32xf32>
    %c1_144 = arith.constant 1 : index
    %c0_145 = arith.constant 0 : index
    %c0_146 = arith.constant 0 : index
    %347 = vector.load %arg13[%c1_144, %c0_145, %c0_146] : memref<2x1x32xf32, #tpu.memory_space<vmem>>, vector<1x1x32xf32>
    %348 = vector.shape_cast %347 : vector<1x1x32xf32> to vector<1x32xf32>
    %349 = vector.broadcast %348 : vector<1x32xf32> to vector<16x32xf32>
    %350 = arith.addf %346, %349 : vector<16x32xf32>
    %351 = arith.addf %350, %323 : vector<16x32xf32>
    %c1_147 = arith.constant 1 : index
    %c0_148 = arith.constant 0 : index
    %c0_149 = arith.constant 0 : index
    %352 = vector.load %arg14[%c1_147, %c0_148, %c0_149] : memref<2x1x32xf32, #tpu.memory_space<vmem>>, vector<1x1x32xf32>
    %353 = vector.shape_cast %352 : vector<1x1x32xf32> to vector<1x32xf32>
    %c1_150 = arith.constant 1 : index
    %c0_151 = arith.constant 0 : index
    %c0_152 = arith.constant 0 : index
    %354 = vector.load %arg15[%c1_150, %c0_151, %c0_152] : memref<2x1x32xf32, #tpu.memory_space<vmem>>, vector<1x1x32xf32>
    %355 = vector.shape_cast %354 : vector<1x1x32xf32> to vector<1x32xf32>
    %cst_153 = arith.constant dense<0.000000e+00> : vector<16xf32>
    %356 = vector.multi_reduction <add>, %351, %cst_153 [1] : vector<16x32xf32> to vector<16xf32>
    %357 = vector.shape_cast %356 : vector<16xf32> to vector<16x1xf32>
    %cst_154 = arith.constant 3.200000e+01 : f32
    %358 = vector.broadcast %cst_154 : f32 to vector<16x1xf32>
    %359 = arith.divf %357, %358 : vector<16x1xf32>
    %360 = vector.broadcast %359 : vector<16x1xf32> to vector<16x32xf32>
    %361 = arith.subf %351, %360 : vector<16x32xf32>
    %362 = arith.mulf %361, %361 : vector<16x32xf32>
    %cst_155 = arith.constant dense<0.000000e+00> : vector<16xf32>
    %363 = vector.multi_reduction <add>, %362, %cst_155 [1] : vector<16x32xf32> to vector<16xf32>
    %364 = vector.shape_cast %363 : vector<16xf32> to vector<16x1xf32>
    %cst_156 = arith.constant 3.200000e+01 : f32
    %365 = vector.broadcast %cst_156 : f32 to vector<16x1xf32>
    %366 = arith.divf %364, %365 : vector<16x1xf32>
    %367 = vector.broadcast %359 : vector<16x1xf32> to vector<16x32xf32>
    %368 = arith.subf %351, %367 : vector<16x32xf32>
    %cst_157 = arith.constant 9.99999996E-13 : f32
    %369 = vector.broadcast %cst_157 : f32 to vector<16x1xf32>
    %370 = arith.addf %366, %369 : vector<16x1xf32>
    %371 = math.rsqrt %370 : vector<16x1xf32>
    %372 = vector.broadcast %371 : vector<16x1xf32> to vector<16x32xf32>
    %373 = arith.mulf %368, %372 : vector<16x32xf32>
    %374 = vector.broadcast %353 : vector<1x32xf32> to vector<16x32xf32>
    %375 = arith.mulf %373, %374 : vector<16x32xf32>
    %376 = vector.broadcast %355 : vector<1x32xf32> to vector<16x32xf32>
    %377 = arith.addf %375, %376 : vector<16x32xf32>
    %378 = vector.extract_strided_slice %377 {offsets = [0, 0], sizes = [1, 32], strides = [1, 1]} : vector<16x32xf32> to vector<1x32xf32>
    %379 = vector.extract_strided_slice %377 {offsets = [8, 0], sizes = [1, 32], strides = [1, 1]} : vector<16x32xf32> to vector<1x32xf32>
    %380 = tpu.concatenate %378, %379 in 0 : vector<1x32xf32>, vector<1x32xf32> -> vector<2x32xf32>
    %c0_158 = arith.constant 0 : index
    %c0_159 = arith.constant 0 : index
    %381 = vector.load %arg16[%c0_158, %c0_159] : memref<32x32xf32, #tpu.memory_space<vmem>>, vector<32x32xf32>
    %cst_160 = arith.constant dense<0.000000e+00> : vector<2x32xf32>
    %382 = tpu.matmul %380, %381, %cst_160 {dimension_numbers = #tpu.dot_dimension_numbers<[1], [0], [0], [1], [0, 0, 1, 1], [], []>} : vector<2x32xf32>, vector<32x32xf32>, vector<2x32xf32> -> vector<2x32xf32>
    %c0_161 = arith.constant 0 : index
    %c0_162 = arith.constant 0 : index
    %383 = vector.load %arg17[%c0_161, %c0_162] : memref<1x32xf32, #tpu.memory_space<vmem>>, vector<1x32xf32>
    %384 = vector.broadcast %383 : vector<1x32xf32> to vector<2x32xf32>
    %385 = arith.addf %382, %384 : vector<2x32xf32>
    %386 = math.tanh %385 : vector<2x32xf32>
    %c0_163 = arith.constant 0 : index
    %c0_164 = arith.constant 0 : index
    %387 = vector.load %arg18[%c0_163, %c0_164] : memref<2x32xf32, #tpu.memory_space<vmem>>, vector<2x32xf32>
    tpu.vector_store %arg18[%c0_163, %c0_164], %386 {strides = array<i32>} : memref<2x32xf32, #tpu.memory_space<vmem>>, vector<2x32xf32>,
    return
  }
}

</mosaic_0001>

<bundles_post_ra>
// kernel: bert_linear_txt_forward.1
= control target key start
LH: loop header
LB: loop body
LE: loop exit
PB: predicated region body
PF: predicated region fallthrough
CT: control target
= control target key end

     0   :  { %s3645_s0 = inlined_call_operand.vmem [shape: f32[16,32], index: 0, kind: input, shape index: {}]   ;;  %s3646_s1 = inlined_call_operand.vmem [shape: f32[2,8], index: 1, kind: input, shape index: {}]   ;;  %s3647_s2 = inlined_call_operand.vmem [shape: f32[1,32], index: 2, kind: input, shape index: {}]   ;;  %s3648_s3 = inlined_call_operand.vmem [shape: f32[1,32], index: 3, kind: input, shape index: {}]   ;;  %s3649_s4 = inlined_call_operand.vmem [shape: f32[2,32,96], index: 4, kind: input, shape index: {}]   ;;  %s3650_s5 = inlined_call_operand.vmem [shape: f32[2,1,96], index: 5, kind: input, shape index: {}]   ;;  %s3651_s6 = inlined_call_operand.vmem [shape: f32[2,32,32], index: 6, kind: input, shape index: {}]   ;;  %s3652_s7 = inlined_call_operand.vmem [shape: f32[2,1,32], index: 7, kind: input, shape index: {}]   ;;  %s3653_s8 = inlined_call_operand.vmem [shape: f32[2,1,32], index: 8, kind: input, shape index: {}]   ;;  %s3654_s9 = inlined_call_operand.vmem [shape: f32[2,1,32], index: 9, kind: input, shape index: {}]   ;;  %s3655_s10 = inlined_call_operand.vmem [shape: f32[2,32,64], index: 10, kind: input, shape index: {}]   ;;  %s3656_s11 = inlined_call_operand.vmem [shape: f32[2,1,64], index: 11, kind: input, shape index: {}]   ;;  %s3657_s12 = inlined_call_operand.vmem [shape: f32[2,64,32], index: 12, kind: input, shape index: {}]   ;;  %s3658_s13 = inlined_call_operand.vmem [shape: f32[2,1,32], index: 13, kind: input, shape index: {}]   ;;  %s3659_s14 = inlined_call_operand.vmem [shape: f32[2,1,32], index: 14, kind: input, shape index: {}]   ;;  %s3660_s15 = inlined_call_operand.vmem [shape: f32[2,1,32], index: 15, kind: input, shape index: {}]   ;;  %s3661_s16 = inlined_call_operand.vmem [shape: f32[32,32], index: 16, kind: input, shape index: {}]   ;;  %s3662_s17 = inlined_call_operand.vmem [shape: f32[1,32], index: 17, kind: input, shape index: {}]   ;;  %s3663_s18 = inlined_call_operand.hbm [shape: f32[2,32], index: 18, kind: output, shape index: {}]  }
   0x1   :  { %3665 = sst [smem:[#allocation5_spill]] %s3645_s0 }
   0x2   :  { %3666 = sst [smem:[#allocation6_spill]] %s3646_s1 }
   0x3   :  { %3667 = sst [smem:[#allocation7_spill]] %s3647_s2 }
   0x4   :  { %s3668_s29 = sld [smem:[#allocation5_spill]]  ;;  %vm64_vm0 = vcmask 261120  }
   0xa   :  { %v60_v0 = vld [vmem:[%s3668_s29] sm:$0xff]  ;;  %v61_v1 = vld [vmem:[%s3668_s29 + $0x8] sm:$0xff] }
   0xb   :  { %23 = vsyncpa [#allocation3], 0  ;;  %v65_v2 = vsel %vm64_vm0, %v60_v0, 0.0  ;;  %v68_v3 = vsel %vm64_vm0, %v61_v1, 0.0  ;;  %v109_v14 = vld [vmem:[%s3649_s4] sm:$0xff]  ;;  %v110_v15 = vld [vmem:[%s3649_s4 + $0x8] sm:$0xff]  ;;  %v280_v45 = vlaneseq }
   0xc   :  { %66 = vadd.xlane.f32.xlu0 %v65_v2  ;;  %v111_v16 = vld [vmem:[%s3649_s4 + $0x10] sm:$0xff]  ;;  %v2930_v17 = vpack.c.bf16 %v110_v15, %v109_v14  ;;  %v112_v18 = vld [vmem:[%s3649_s4 + $0x18] sm:$0xff]  ;;  %s3669_s27 = sld [smem:[#allocation7_spill]]  ;;  %v2555_v29 = vld [vmem:[%s3648_s3] ss:$0 sm:$0xff]  ;;  %v3112_v36 = vmov 0.0  }
   0xd   :  { %v2934_v19 = vpack.c.bf16 %v112_v18, %v111_v16  ;;  %2746 = vmatprep.subr.mxu1 %v3112_v36  ;;  %vm3113_vm1 = vmmov 0   ;;  %v2556_v37 = vld [vmem:[%s3650_s5] ss:$0 sm:$0xff]  ;;  %s3114_s0 = smov 96   ;;  %s3115_s19 = smov 80   ;;  %vm204_vm2 = vcmask 130048  }
   0xe   :  { %2931 = vmatprep.subr.bf16.mxu0 %v2930_v17  ;;  %2748 = vmatprep.mubr.msk.f32.mxu1 %vm3113_vm1, %v3112_v36  ;;  %s3116_s1 = smov 112   ;;  %v281_v46 = vshrl.u32 %v280_v45, 7  ;;  %s3670_s22 = sld [smem:[#allocation6_spill]]  ;;  %vm285_vm3 = vcmask 64512   ;;  %vm1150_vm4 = vcmask 523264   ;;  %vm2451_vm5 = vcmask 1040384  }
   0xf   :  { %2933 = vmatpush3.bf16.msra.mxu0 %v2930_v17  ;;  %s3117_s2 = smov 64   ;;  %s3118_s23 = smov 48   ;;  %vm2538_vm6 = vcmask 254976  }
  0x10   :  { %69 = vadd.xlane.f32.xlu0 %v68_v3  ;;  %2935 = vmatprep.subr.bf16.mxu0 %v2934_v19  ;;  %v282_v47 = vsub.s32 0, %v281_v46  ;;  %v625_v54 = vsub.s32 1, %v281_v46  ;;  %s3119_s20 = smov 16  }
  0x12   :  { %v2554_v27 = vld [vmem:[%s3669_s27] ss:$0 sm:$0xff] }
  0x13   :  { %2937 = vmatpush3.bf16.msra.mxu0 %v2934_v19 }
  0x14   :  { %2766 = vmatprep.subr.mxu0 %v3112_v36  ;;  %v108_v48 = vld [vmem:[%s3670_s22] sm:$0x3] }
  0x15   :  { %v3289_v49 = vrot.slane %v108_v48, %v282_v47  ;;  %v3293_v56 = vrot.slane %v108_v48, %v625_v54  ;;  %v888_v54 = vld [vmem:[%s3651_s6 + $0x8] sm:$0xff] }
  0x99   :  { %v67_v4 = vpop.xlane.xlu0 %66 }
  0x9a   :  { %v72_v5 = vmul.f32 0.03125, %v67_v4 }
  0x9c   :  { %v74_v6 = vsub.f32 %v60_v0, %v72_v5 }
  0x9d   :  { %v70_v7 = vpop.xlane.xlu0 %69 }
  0x9e   :  { %v73_v8 = vmul.f32 0.03125, %v70_v7  ;;  %v76_v9 = vmul.f32 %v74_v6, %v74_v6 }
  0xa0   :  { %v75_v10 = vsub.f32 %v61_v1, %v73_v8  ;;  %v78_v11 = vsel %vm64_vm0, %v76_v9, 0.0 }
  0xa1   :  { %79 = vadd.xlane.f32.xlu1 %v78_v11 }
  0xa2   :  { %v77_v12 = vmul.f32 %v75_v10, %v75_v10 }
  0xa4   :  { %v81_v13 = vsel %vm64_vm0, %v77_v12, 0.0 }
  0xa5   :  { %82 = vadd.xlane.f32.xlu1 %v81_v13 }
 0x12e   :  { %v80_v20 = vpop.xlane.xlu1 %79 }
 0x12f   :  { %v84_v21 = vmul.f32 0.03125, %v80_v20 }
 0x131   :  { %v86_v22 = vadd.f32 1e-12, %v84_v21 }
 0x132   :  { %v83_v23 = vpop.xlane.xlu1 %82 }
 0x133   :  { %3026 = vrsqrt.f32 %v86_v22  ;;  %v85_v24 = vmul.f32 0.03125, %v83_v23 }
 0x135   :  { %v87_v25 = vadd.f32 1e-12, %v85_v24 }
 0x137   :  { %3028 = vrsqrt.f32 %v87_v25 }
 0x13d   :  { %v3027_v26 = vpop.eup %3026 }
 0x13e   :  { %v90_v28 = vmul.f32 %v3027_v26, %v74_v6 }
 0x140   :  { %v98_v30 = vmul.f32 %v2554_v27, %v90_v28 }
 0x141   :  { %v3029_v31 = vpop.eup %3028 }
 0x142   :  { %v91_v32 = vmul.f32 %v3029_v31, %v75_v10  ;;  %v3245_v33 = vadd.f32 %v2555_v29, %v98_v30 }
 0x144   :  { %v99_v34 = vmul.f32 %v2554_v27, %v91_v32  ;;  %2743 = vmatprep.mubr.msk.f32.mxu0 %vm64_vm0, %v3245_v33 }
 0x146   :  { %v3249_v35 = vadd.f32 %v2555_v29, %v99_v34 }
 0x148   :  { %2744 = vmatmul.mubr.msk.f32.vlgmr.msra.gmra.mrb[0].mxu0 %vm64_vm0, %v3249_v35 }
 0x149   :  { %2768 = vmatprep.mubr.msk.f32.mxu0 %vm3113_vm1, %v3112_v36 }
 0x21b   :  { %v2745_v38 = vpop.f32.mrb[0].mxu0 }
 0x21c   :  { %v192_v39 = vpop.f32.mrb[1].mxu0  ;;  %v3268_v41 = vadd.f32 %v2745_v38, %v2556_v37 }
 0x21d   :  { %v3262_v40 = vadd.f32 %v2556_v37, %v192_v39 }
 0x21f   :  { %202 = vrot.lane.b32.xlu0 %v3262_v40, %s3114_s0 }
 0x223   :  { %375 = vrot.lane.b32.xlu0 %v3262_v40, %s3115_s19 }
 0x227   :  { %546 = vrot.lane.b32.xlu0 %v3268_v41, %s3114_s0 }
 0x22b   :  { %715 = vrot.lane.b32.xlu0 %v3268_v41, %s3116_s1 }
 0x291   :  { %v203_v42 = vpop.permute.xlu0 %202 }
 0x292   :  { %2747 = vmatpush3.xpose.msk.msra.mxu1 %vm204_vm2, %v203_v42 }
 0x293   :  { %2751 = vmatprep.subr.mxu1 %v3112_v36 }
 0x295   :  { %2749 = vmatmul.mubr.msk.f32.vlgmr.msra.gmra.mrb[0].mxu1 %vm204_vm2, %v3262_v40  ;;  %v376_v43 = vpop.permute.xlu0 %375 }
 0x296   :  { %2753 = vmatprep.mubr.msk.f32.mxu1 %vm3113_vm1, %v3112_v36 }
 0x299   :  { %v547_v44 = vpop.permute.xlu0 %546 }
 0x29a   :  { %2767 = vmatpush3.xpose.msk.msra.mxu0 %vm204_vm2, %v547_v44 }
 0x29b   :  { %2776 = vmatprep.subr.mxu0 %v3112_v36 }
 0x29d   :  { %2769 = vmatmul.mubr.msk.f32.vlgmr.msra.gmra.mrb[2].mxu0 %vm204_vm2, %v3268_v41  ;;  %v716_v7 = vpop.permute.xlu0 %715 }
 0x29e   :  { %2778 = vmatprep.mubr.msk.f32.mxu0 %vm3113_vm1, %v3112_v36 }
 0x368   :  { %v275_v50 = vpop.f32.mrb[0].mxu1 }
 0x369   :  { %v279_v51 = vmul.f32 0.25, %v275_v50  ;;  %v2750_v52 = vpop.f32.mrb[1].mxu1 }
 0x36b   :  { %v284_v53 = vadd.f32 %v3289_v49, %v279_v51 }
 0x36d   :  { %v286_v55 = vsel %vm285_vm3, %v284_v53, -inf }
 0x36e   :  { %287 = vmax.xlane.f32.xlu1 %v286_v55 }
 0x370   :  { %v618_v57 = vpop.f32.mrb[2].mxu0 }
 0x371   :  { %v622_v58 = vmul.f32 0.25, %v618_v57  ;;  %v2770_v59 = vpop.f32.mrb[3].mxu0  ;;  %v889_v57 = vld [vmem:[%s3651_s6 + $0x10] sm:$0xff] }
 0x373   :  { %v627_v60 = vadd.f32 %v3293_v56, %v622_v58  ;;  %v890_v58 = vld [vmem:[%s3651_s6 + $0x18] sm:$0xff] }
 0x374   :  { %v2942_v59 = vpack.c.bf16 %v890_v58, %v889_v57  ;;  %v1140_v57 = vld [vmem:[%s3657_s12 + $0x28] sm:$0xff] }
 0x375   :  { %v628_v61 = vsel %vm285_vm3, %v627_v60, -inf }
 0x376   :  { %629 = vmax.xlane.f32.xlu0 %v628_v61 }
 0x37f   :  { %297 = vrot.lane.b32.xlu1 %v3262_v40, %s3117_s2 }
 0x383   :  { %373 = vrot.lane.b32.xlu1 %v3262_v40, %s3116_s1 }
 0x3fb   :  { %v288_v62 = vpop.xlane.xlu1 %287 }
 0x3fc   :  { %v289_v63 = vsub.f32 %v284_v53, %v288_v62  ;;  %v887_v53 = vld [vmem:[%s3651_s6] sm:$0xff] }
 0x3fd   :  { %v2938_v55 = vpack.c.bf16 %v888_v54, %v887_v53  ;;  %v1138_v53 = vld [vmem:[%s3657_s12 + $0x18] sm:$0xff] }
 0x3fe   :  { %v290_v0 = vmul.f32 1.442695, %v289_v63 }
 0x3ff   :  { %v298_v1 = vpop.permute.xlu1 %297 }
 0x400   :  { %3030 = vpow2.f32 %v290_v0  ;;  %2752 = vmatpush3.msra.mxu1 %v298_v1 }
 0x401   :  { %2756 = vmatprep.subr.mxu1 %v3112_v36 }
 0x403   :  { %v374_v4 = vpop.permute.xlu1 %373  ;;  %v630_v10 = vpop.xlane.xlu0 %629 }
 0x404   :  { %v631_v11 = vsub.f32 %v627_v60, %v630_v10 }
 0x406   :  { %v632_v15 = vmul.f32 1.442695, %v631_v11 }
 0x40a   :  { %v3031_v2 = vpop.eup %3030 }
 0x40b   :  { %v292_v3 = vsel %vm285_vm3, %v3031_v2, 0.0 }
 0x40c   :  { %293 = vadd.xlane.f32.xlu1 %v292_v3 }
 0x41d   :  { %717 = vrot.lane.b32.xlu1 %v3268_v41, %s3115_s19 }
 0x499   :  { %v294_v5 = vpop.xlane.xlu1 %293 }
 0x49a   :  { %3032 = vrcp.f32 %v294_v5 }
 0x49b   :  { %3034 = vpow2.f32 %v632_v15 }
 0x49d   :  { %v718_v6 = vpop.permute.xlu1 %717 }
 0x49e   :  { %2777 = vmatpush3.xpose.msk.msra.mxu0 %vm204_vm2, %v718_v6  ;;  %v2571_v6 = vld [vmem:[%s3652_s7] ss:$0 sm:$0xff] }
 0x49f   :  { %2939 = vmatprep.subr.bf16.mxu0 %v2938_v55 }
 0x4a1   :  { %2779 = vmatmul.mubr.msk.f32.vlgmr.msra.gmra.mrb[4].mxu0 %vm204_vm2, %v716_v7 }
 0x4a2   :  { %2941 = vmatpush3.bf16.msra.mxu0 %v2938_v55  ;;  %v1139_v55 = vld [vmem:[%s3657_s12 + $0x20] sm:$0xff] }
 0x4a3   :  { %2943 = vmatprep.subr.bf16.mxu0 %v2942_v59  ;;  %v2962_v58 = vpack.c.bf16 %v1140_v57, %v1139_v55  ;;  %v2582_v55 = vld [vmem:[%s3659_s14] ss:$0 sm:$0xff] }
 0x4a4   :  { %v3033_v8 = vpop.eup %3032 }
 0x4a5   :  { %v296_v9 = vmul.f32 %v3033_v8, %v3031_v2  ;;  %v3035_v25 = vpop.eup %3034 }
 0x4a6   :  { %v634_v26 = vsel %vm285_vm3, %v3035_v25, 0.0  ;;  %2945 = vmatpush3.bf16.msra.mxu0 %v2942_v59  ;;  %v1141_v59 = vld [vmem:[%s3657_s12 + $0x30] sm:$0xff] }
 0x4a7   :  { %2754 = vmatmul.mubr.msk.f32.vlgmr.msra.gmra.mrb[2].mxu1 %vm285_vm3, %v296_v9 }
 0x4a8   :  { %2757 = vmatpush3.xpose.msk.msra.mxu1 %vm204_vm2, %v376_v43  ;;  %2758 = vmatprep.mubr.msk.f32.mxu1 %vm3113_vm1, %v3112_v36 }
 0x4a9   :  { %2761 = vmatprep.subr.mxu1 %v3112_v36 }
 0x4ab   :  { %2759 = vmatmul.mubr.msk.f32.vlgmr.msra.gmra.mrb[4].mxu1 %vm204_vm2, %v374_v4 }
 0x4ac   :  { %2763 = vmatprep.mubr.msk.f32.mxu1 %vm3113_vm1, %v3112_v36 }
 0x574   :  { %v789_v12 = vpop.f32.mrb[4].mxu0 }
 0x575   :  { %v793_v13 = vmul.f32 0.25, %v789_v12  ;;  %v2780_v14 = vpop.f32.mrb[5].mxu0 }
 0x577   :  { %v794_v16 = vadd.f32 %v793_v13, %v3293_v56 }
 0x579   :  { %v795_v17 = vsel %vm285_vm3, %v794_v16, -inf }
 0x57a   :  { %v3317_v18 = vpop.f32.mrb[2].mxu1  ;;  %796 = vmax.xlane.f32.xlu0 %v795_v17 }
 0x57b   :  { %v2755_v19 = vpop.f32.mrb[3].mxu1 }
 0x57e   :  { %v447_v20 = vpop.f32.mrb[4].mxu1 }
 0x57f   :  { %v451_v21 = vmul.f32 0.25, %v447_v20  ;;  %v2760_v22 = vpop.f32.mrb[5].mxu1 }
 0x581   :  { %v452_v23 = vadd.f32 %v451_v21, %v3289_v49 }
 0x583   :  { %v453_v24 = vsel %vm285_vm3, %v452_v23, -inf }
 0x584   :  { %454 = vmax.xlane.f32.xlu1 %v453_v24  ;;  %v1026_v24 = vld [vmem:[%s3655_s10 + $0x8] sm:$0xff] }
 0x588   :  { %635 = vadd.xlane.f32.xlu1 %v634_v26  ;;  %v1027_v26 = vld [vmem:[%s3655_s10 + $0x10] sm:$0xff] }
 0x599   :  { %464 = vrot.lane.b32.xlu1 %v3262_v40, %s3118_s23 }
 0x59d   :  { %806 = vrot.lane.b32.xlu1 %v3268_v41, %s3118_s23 }
 0x607   :  { %v797_v27 = vpop.xlane.xlu0 %796 }
 0x608   :  { %v798_v28 = vsub.f32 %v794_v16, %v797_v27  ;;  %v1028_v27 = vld [vmem:[%s3655_s10 + $0x18] sm:$0xff] }
 0x60a   :  { %v799_v29 = vmul.f32 1.442695, %v798_v28  ;;  %v2950_v28 = vpack.c.bf16 %v1028_v27, %v1027_v26 }
 0x60c   :  { %3036 = vpow2.f32 %v799_v29 }
 0x611   :  { %v455_v30 = vpop.xlane.xlu1 %454 }
 0x612   :  { %v456_v31 = vsub.f32 %v452_v23, %v455_v30 }
 0x614   :  { %v457_v32 = vmul.f32 1.442695, %v456_v31 }
 0x615   :  { %v636_v34 = vpop.xlane.xlu1 %635 }
 0x616   :  { %v3037_v37 = vpop.eup %3036  ;;  %3038 = vpow2.f32 %v457_v32 }
 0x617   :  { %v801_v38 = vsel %vm285_vm3, %v3037_v37, 0.0 }
 0x618   :  { %802 = vadd.xlane.f32.xlu0 %v801_v38 }
 0x619   :  { %v465_v39 = vpop.permute.xlu1 %464 }
 0x61a   :  { %2762 = vmatpush3.msra.mxu1 %v465_v39  ;;  %v2574_v39 = vld [vmem:[%s3653_s8] ss:$0 sm:$0xff] }
 0x61b   :  { %2771 = vmatprep.subr.mxu1 %v3112_v36 }
 0x620   :  { %v3039_v40 = vpop.eup %3038 }
 0x621   :  { %v459_v42 = vsel %vm285_vm3, %v3039_v40, 0.0 }
 0x622   :  { %460 = vadd.xlane.f32.xlu0 %v459_v42  ;;  %v2575_v42 = vld [vmem:[%s3654_s9] ss:$0 sm:$0xff] }
 0x638   :  { %639 = vrot.lane.b32.xlu0 %v3268_v41, %s3117_s2  ;;  %v807_v41 = vpop.permute.xlu1 %806 }
 0x6a5   :  { %v803_v43 = vpop.xlane.xlu0 %802 }
 0x6af   :  { %v461_v44 = vpop.xlane.xlu0 %460 }
 0x6b0   :  { %3040 = vrcp.f32 %v461_v44 }
 0x6b1   :  { %3042 = vrcp.f32 %v636_v34 }
 0x6b2   :  { %3044 = vrcp.f32 %v803_v43 }
 0x6b3   :  { %v640_v48 = vpop.permute.xlu0 %639 }
 0x6ba   :  { %v3041_v45 = vpop.eup %3040 }
 0x6bb   :  { %v463_v46 = vmul.f32 %v3041_v45, %v3039_v40  ;;  %v3043_v47 = vpop.eup %3042 }
 0x6bc   :  { %v638_v50 = vmul.f32 %v3043_v47, %v3035_v25  ;;  %v3045_v51 = vpop.eup %3044 }
 0x6bd   :  { %2764 = vmatmul.mubr.msk.f32.vlgmr.msra.gmra.mrb[6].mxu1 %vm285_vm3, %v463_v46  ;;  %v805_v52 = vmul.f32 %v3045_v51, %v3037_v37  ;;  %v1136_v51 = vld [vmem:[%s3657_s12 + $0x8] sm:$0xff] }
 0x6be   :  { %2772 = vmatpush3.msra.mxu1 %v640_v48  ;;  %2773 = vmatprep.mubr.msk.f32.mxu1 %vm3113_vm1, %v3112_v36 }
 0x6bf   :  { %2781 = vmatprep.subr.mxu1 %v3112_v36 }
 0x6c1   :  { %2774 = vmatmul.mubr.msk.f32.vlgmr.msra.gmra.mrb[8].mxu1 %vm285_vm3, %v638_v50  ;;  %v1135_v50 = vld [vmem:[%s3657_s12] sm:$0xff] }
 0x6c2   :  { %2782 = vmatpush3.msra.mxu1 %v807_v41  ;;  %2783 = vmatprep.mubr.msk.f32.mxu1 %vm3113_vm1, %v3112_v36  ;;  %v2954_v41 = vpack.c.bf16 %v1136_v51, %v1135_v50 }
 0x6c4   :  { %2955 = vmatprep.subr.bf16.mxu0 %v2954_v41 }
 0x6c5   :  { %2784 = vmatmul.mubr.msk.f32.vlgmr.msra.gmra.mrb[10].mxu1 %vm285_vm3, %v805_v52  ;;  %v1137_v52 = vld [vmem:[%s3657_s12 + $0x10] sm:$0xff] }
 0x6c6   :  { %v2958_v54 = vpack.c.bf16 %v1138_v53, %v1137_v52 }
 0x790   :  { %v536_v60 = vpop.f32.mrb[6].mxu1 }
 0x791   :  { %541 = vrot.lane.b32.xlu1 %v536_v60, %s3119_s20  ;;  %v2765_v61 = vpop.f32.mrb[7].mxu1  ;;  %v1142_v60 = vld [vmem:[%s3657_s12 + $0x38] sm:$0xff] }
 0x792   :  { %v2966_v61 = vpack.c.bf16 %v1142_v60, %v1141_v59  ;;  %v2583_v60 = vld [vmem:[%s3660_s15] ss:$0 sm:$0xff] }
 0x794   :  { %v711_v62 = vpop.f32.mrb[8].mxu1 }
 0x795   :  { %v2775_v63 = vpop.f32.mrb[9].mxu1 }
 0x798   :  { %v878_v0 = vpop.f32.mrb[10].mxu1 }
 0x799   :  { %883 = vrot.lane.b32.xlu1 %v878_v0, %s3119_s20  ;;  %v2785_v1 = vpop.f32.mrb[11].mxu1 }
 0x803   :  { %v542_v2 = vpop.permute.xlu1 %541 }
 0x804   :  { %v544_v3 = vsel %vm204_vm2, %v3317_v18, %v542_v2 }
 0x805   :  { %2794 = vmatprep.mubr.msk.f32.mxu0 %vm64_vm0, %v544_v3 }
 0x80b   :  { %v884_v4 = vpop.permute.xlu1 %883 }
 0x80c   :  { %v886_v5 = vsel %vm204_vm2, %v711_v62, %v884_v4  ;;  %v2576_v62 = vld [vmem:[%s3656_s11] ss:$0 sm:$0xff] }
 0x80d   :  { %2795 = vmatmul.mubr.msk.f32.vlgmr.msra.gmra.mrb[6].mxu0 %vm64_vm0, %v886_v5 }
 0x80e   :  { %2957 = vmatpush3.bf16.msra.mxu0 %v2954_v41 }
 0x80f   :  { %2959 = vmatprep.subr.bf16.mxu0 %v2958_v54 }
 0x812   :  { %2961 = vmatpush3.bf16.msra.mxu0 %v2958_v54 }
 0x813   :  { %2963 = vmatprep.subr.bf16.mxu0 %v2962_v58 }
 0x816   :  { %2965 = vmatpush3.bf16.msra.mxu0 %v2962_v58 }
 0x817   :  { %2967 = vmatprep.subr.bf16.mxu0 %v2966_v61 }
 0x81a   :  { %2969 = vmatpush3.bf16.msra.mxu0 %v2966_v61 }
 0x81b   :  { %2848 = vmatprep.subr.mxu0 %v3112_v36 }
 0x8e0   :  { %v2796_v7 = vpop.f32.mrb[6].mxu0 }
 0x8e1   :  { %v976_v8 = vadd.f32 %v2796_v7, %v2571_v6  ;;  %v970_v9 = vpop.f32.mrb[7].mxu0 }
 0x8e2   :  { %v971_v10 = vadd.f32 %v2571_v6, %v970_v9 }
 0x8e3   :  { %v980_v11 = vadd.f32 %v976_v8, %v3249_v35 }
 0x8e4   :  { %v979_v12 = vadd.f32 %v971_v10, %v3245_v33  ;;  %v1025_v33 = vld [vmem:[%s3655_s10] sm:$0xff] }
 0x8e5   :  { %v986_v13 = vsel %vm64_vm0, %v980_v11, 0.0  ;;  %v2946_v25 = vpack.c.bf16 %v1026_v24, %v1025_v33 }
 0x8e6   :  { %987 = vadd.xlane.f32.xlu1 %v986_v13  ;;  %v983_v14 = vsel %vm64_vm0, %v979_v12, 0.0 }
 0x8e7   :  { %984 = vadd.xlane.f32.xlu0 %v983_v14  ;;  %2947 = vmatprep.subr.bf16.mxu1 %v2946_v25 }
 0x8e8   :  { %2949 = vmatpush3.bf16.msra.mxu1 %v2946_v25 }
 0x8e9   :  { %2951 = vmatprep.subr.bf16.mxu1 %v2950_v28 }
 0x8ec   :  { %2953 = vmatpush3.bf16.msra.mxu1 %v2950_v28 }
 0x973   :  { %v988_v15 = vpop.xlane.xlu1 %987 }
 0x974   :  { %v990_v16 = vmul.f32 0.03125, %v988_v15  ;;  %v985_v17 = vpop.xlane.xlu0 %984 }
 0x975   :  { %v989_v18 = vmul.f32 0.03125, %v985_v17 }
 0x976   :  { %v992_v19 = vsub.f32 %v980_v11, %v990_v16 }
 0x977   :  { %v991_v20 = vsub.f32 %v979_v12, %v989_v18 }
 0x978   :  { %v994_v23 = vmul.f32 %v992_v19, %v992_v19 }
 0x979   :  { %v993_v21 = vmul.f32 %v991_v20, %v991_v20 }
 0x97a   :  { %v998_v35 = vsel %vm64_vm0, %v994_v23, 0.0 }
 0x97b   :  { %v995_v22 = vsel %vm64_vm0, %v993_v21, 0.0  ;;  %v2579_v21 = vld [vmem:[%s3658_s13] ss:$0 sm:$0xff] }
 0x97c   :  { %996 = vadd.xlane.f32.xlu0 %v995_v22 }
 0x980   :  { %999 = vadd.xlane.f32.xlu0 %v998_v35 }
 0xa09   :  { %v997_v29 = vpop.xlane.xlu0 %996 }
 0xa0a   :  { %v1001_v30 = vmul.f32 0.03125, %v997_v29 }
 0xa0c   :  { %v1003_v31 = vadd.f32 1e-12, %v1001_v30 }
 0xa0d   :  { %v1000_v32 = vpop.xlane.xlu0 %999 }
 0xa0e   :  { %3046 = vrsqrt.f32 %v1003_v31  ;;  %v1002_v34 = vmul.f32 0.03125, %v1000_v32 }
 0xa10   :  { %v1004_v37 = vadd.f32 1e-12, %v1002_v34 }
 0xa12   :  { %3048 = vrsqrt.f32 %v1004_v37 }
 0xa18   :  { %v3047_v38 = vpop.eup %3046 }
 0xa19   :  { %v1007_v40 = vmul.f32 %v3047_v38, %v991_v20 }
 0xa1b   :  { %v1015_v43 = vmul.f32 %v2574_v39, %v1007_v40 }
 0xa1c   :  { %v3049_v44 = vpop.eup %3048 }
 0xa1d   :  { %v1008_v45 = vmul.f32 %v3049_v44, %v992_v19  ;;  %v1023_v46 = vadd.f32 %v2575_v42, %v1015_v43  ;;  %v2585_v43 = vld [vmem:[%s3649_s4 + $0x28] sm:$0xff] }
 0xa1f   :  { %v1016_v47 = vmul.f32 %v2574_v39, %v1008_v45  ;;  %2805 = vmatprep.mubr.msk.f32.mxu1 %vm64_vm0, %v1023_v46  ;;  %v2586_v45 = vld [vmem:[%s3649_s4 + $0x30] sm:$0xff] }
 0xa21   :  { %v1024_v48 = vadd.f32 %v2575_v42, %v1016_v47  ;;  %v2584_v42 = vld [vmem:[%s3649_s4 + $0x20] sm:$0xff] }
 0xa22   :  { %v2970_v44 = vpack.c.bf16 %v2585_v43, %v2584_v42 }
 0xa23   :  { %2806 = vmatmul.mubr.msk.f32.vlgmr.msra.gmra.mrb[12].mxu1 %vm64_vm0, %v1024_v48 }
 0xa24   :  { %2971 = vmatprep.subr.bf16.mxu1 %v2970_v44 }
 0xa25   :  { %2973 = vmatpush3.bf16.msra.mxu1 %v2970_v44 }
 0xaf6   :  { %v2807_v63 = vpop.f32.mrb[12].mxu1 }
 0xaf7   :  { %v1114_v0 = vadd.f32 %v2807_v63, %v2576_v62  ;;  %v1108_v1 = vpop.f32.mrb[13].mxu1 }
 0xaf8   :  { %v1109_v2 = vadd.f32 %v2576_v62, %v1108_v1  ;;  %v2589_v1 = vld [vmem:[%s3650_s5 + $0x1] ss:$0 sm:$0xff] }
 0xaf9   :  { %v1118_v3 = vmul.f32 %v1114_v0, %v1114_v0 }
 0xafa   :  { %v1117_v4 = vmul.f32 %v1109_v2, %v1109_v2 }
 0xafb   :  { %v1120_v5 = vmul.f32 %v1118_v3, %v1114_v0 }
 0xafc   :  { %v1119_v6 = vmul.f32 %v1117_v4, %v1109_v2 }
 0xafd   :  { %v1122_v7 = vmul.f32 0.044715, %v1120_v5 }
 0xafe   :  { %v1121_v8 = vmul.f32 0.044715, %v1119_v6 }
 0xaff   :  { %v1124_v9 = vadd.f32 %v1122_v7, %v1114_v0 }
 0xb00   :  { %v1123_v10 = vadd.f32 %v1121_v8, %v1109_v2 }
 0xb01   :  { %v1126_v11 = vmul.f32 0.7978846, %v1124_v9 }
 0xb02   :  { %v1125_v12 = vmul.f32 0.7978846, %v1123_v10 }
 0xb03   :  { %3050 = vtanh.f32 %v1126_v11 }
 0xb04   :  { %3052 = vtanh.f32 %v1125_v12 }
 0xb0d   :  { %v3051_v13 = vpop.eup %3050 }
 0xb0e   :  { %v3053_v14 = vpop.eup %3052  ;;  %v1130_v15 = vadd.f32 1.0, %v3051_v13 }
 0xb0f   :  { %v1129_v16 = vadd.f32 1.0, %v3053_v14 }
 0xb10   :  { %v1132_v17 = vmul.f32 0.5, %v1130_v15 }
 0xb11   :  { %v1131_v18 = vmul.f32 0.5, %v1129_v16 }
 0xb12   :  { %v1134_v20 = vmul.f32 %v1132_v17, %v1114_v0 }
 0xb13   :  { %v1133_v19 = vmul.f32 %v1131_v18, %v1109_v2 }
 0xb15   :  { %2824 = vmatprep.mubr.msk.f32.mxu0 %vm1150_vm4, %v1133_v19 }
 0xb16   :  { %2825 = vmatmul.mubr.msk.f32.vlgmr.msra.gmra.mrb[8].mxu0 %vm1150_vm4, %v1134_v20 }
 0xb17   :  { %2850 = vmatprep.mubr.msk.f32.mxu0 %vm3113_vm1, %v3112_v36 }
 0xbe9   :  { %v2826_v22 = vpop.f32.mrb[8].mxu0 }
 0xbea   :  { %v1229_v23 = vadd.f32 %v2826_v22, %v2579_v21  ;;  %v1223_v35 = vpop.f32.mrb[9].mxu0 }
 0xbeb   :  { %v1224_v33 = vadd.f32 %v2579_v21, %v1223_v35 }
 0xbec   :  { %v1233_v24 = vadd.f32 %v1229_v23, %v1024_v48 }
 0xbed   :  { %v1232_v25 = vadd.f32 %v1224_v33, %v1023_v46  ;;  %v2587_v46 = vld [vmem:[%s3649_s4 + $0x38] sm:$0xff] }
 0xbee   :  { %v1239_v26 = vsel %vm64_vm0, %v1233_v24, 0.0  ;;  %v2974_v47 = vpack.c.bf16 %v2587_v46, %v2586_v45 }
 0xbef   :  { %1240 = vadd.xlane.f32.xlu1 %v1239_v26  ;;  %v1236_v27 = vsel %vm64_vm0, %v1232_v25, 0.0 }
 0xbf0   :  { %1237 = vadd.xlane.f32.xlu0 %v1236_v27  ;;  %2975 = vmatprep.subr.bf16.mxu1 %v2974_v47 }
 0xbf1   :  { %2977 = vmatpush3.bf16.msra.mxu1 %v2974_v47 }
 0xbf2   :  { %2838 = vmatprep.subr.mxu1 %v3112_v36 }
 0xc7c   :  { %v1241_v28 = vpop.xlane.xlu1 %1240 }
 0xc7d   :  { %v1243_v29 = vmul.f32 0.03125, %v1241_v28  ;;  %v1238_v30 = vpop.xlane.xlu0 %1237 }
 0xc7e   :  { %v1242_v31 = vmul.f32 0.03125, %v1238_v30 }
 0xc7f   :  { %v1245_v32 = vsub.f32 %v1233_v24, %v1243_v29 }
 0xc80   :  { %v1244_v34 = vsub.f32 %v1232_v25, %v1242_v31 }
 0xc81   :  { %v1247_v37 = vmul.f32 %v1245_v32, %v1245_v32 }
 0xc82   :  { %v1246_v38 = vmul.f32 %v1244_v34, %v1244_v34 }
 0xc83   :  { %v1251_v39 = vsel %vm64_vm0, %v1247_v37, 0.0 }
 0xc84   :  { %1252 = vadd.xlane.f32.xlu1 %v1251_v39  ;;  %v1248_v40 = vsel %vm64_vm0, %v1246_v38, 0.0 }
 0xc85   :  { %1249 = vadd.xlane.f32.xlu0 %v1248_v40 }
 0xd11   :  { %v1253_v48 = vpop.xlane.xlu1 %1252 }
 0xd12   :  { %v1255_v50 = vmul.f32 0.03125, %v1253_v48  ;;  %v1250_v51 = vpop.xlane.xlu0 %1249 }
 0xd13   :  { %v1254_v41 = vmul.f32 0.03125, %v1250_v51 }
 0xd14   :  { %v1257_v52 = vadd.f32 1e-12, %v1255_v50 }
 0xd15   :  { %v1256_v53 = vadd.f32 1e-12, %v1254_v41 }
 0xd16   :  { %3054 = vrsqrt.f32 %v1257_v52 }
 0xd17   :  { %3056 = vrsqrt.f32 %v1256_v53 }
 0xd20   :  { %v3055_v54 = vpop.eup %3054 }
 0xd21   :  { %v3057_v57 = vpop.eup %3056  ;;  %v1261_v58 = vmul.f32 %v3055_v54, %v1245_v32 }
 0xd22   :  { %v1260_v59 = vmul.f32 %v3057_v57, %v1244_v34 }
 0xd23   :  { %v1269_v61 = vmul.f32 %v2582_v55, %v1261_v58 }
 0xd24   :  { %v1268_v62 = vmul.f32 %v2582_v55, %v1260_v59 }
 0xd25   :  { %v3447_v0 = vadd.f32 %v2583_v60, %v1269_v61 }
 0xd26   :  { %v3445_v63 = vadd.f32 %v2583_v60, %v1268_v62 }
 0xd28   :  { %2835 = vmatprep.mubr.msk.f32.mxu1 %vm64_vm0, %v3445_v63 }
 0xd29   :  { %2836 = vmatmul.mubr.msk.f32.vlgmr.msra.gmra.mrb[14].mxu1 %vm64_vm0, %v3447_v0 }
 0xd2a   :  { %2840 = vmatprep.mubr.msk.f32.mxu1 %vm3113_vm1, %v3112_v36 }
 0xdfc   :  { %v2837_v2 = vpop.f32.mrb[14].mxu1 }
 0xdfd   :  { %v1363_v3 = vpop.f32.mrb[15].mxu1  ;;  %v3464_v5 = vadd.f32 %v2837_v2, %v2589_v1 }
 0xdfe   :  { %v3458_v4 = vadd.f32 %v2589_v1, %v1363_v3 }
 0xe00   :  { %1540 = vrot.lane.b32.xlu1 %v3458_v4, %s3115_s19  ;;  %1373 = vrot.lane.b32.xlu0 %v3458_v4, %s3114_s0 }
 0xe04   :  { %1538 = vrot.lane.b32.xlu1 %v3458_v4, %s3116_s1  ;;  %1878 = vrot.lane.b32.xlu0 %v3464_v5, %s3115_s19 }
 0xe08   :  { %1711 = vrot.lane.b32.xlu1 %v3464_v5, %s3114_s0 }
 0xe0c   :  { %1876 = vrot.lane.b32.xlu1 %v3464_v5, %s3116_s1 }
 0xe72   :  { %v1541_v6 = vpop.permute.xlu1 %1540  ;;  %v1374_v7 = vpop.permute.xlu0 %1373 }
 0xe73   :  { %2839 = vmatpush3.xpose.msk.msra.mxu1 %vm204_vm2, %v1374_v7  ;;  %2849 = vmatpush3.xpose.msk.msra.mxu0 %vm204_vm2, %v1541_v6  ;;  %v2604_v7 = vld [vmem:[%s3651_s6 + $0x20] sm:$0xff] }
 0xe74   :  { %2858 = vmatprep.subr.mxu0 %v3112_v36  ;;  %2843 = vmatprep.subr.mxu1 %v3112_v36 }
 0xe76   :  { %v1539_v8 = vpop.permute.xlu1 %1538  ;;  %2841 = vmatmul.mubr.msk.f32.vlgmr.msra.gmra.mrb[16].mxu1 %vm204_vm2, %v3458_v4  ;;  %v1879_v10 = vpop.permute.xlu0 %1878 }
 0xe77   :  { %2851 = vmatmul.mubr.msk.f32.vlgmr.msra.gmra.mrb[10].mxu0 %vm204_vm2, %v1539_v8  ;;  %2845 = vmatprep.mubr.msk.f32.mxu1 %vm3113_vm1, %v3112_v36  ;;  %v2605_v8 = vld [vmem:[%s3651_s6 + $0x28] sm:$0xff] }
 0xe78   :  { %2860 = vmatprep.mubr.msk.f32.mxu0 %vm3113_vm1, %v3112_v36 }
 0xe7a   :  { %v1712_v9 = vpop.permute.xlu1 %1711 }
 0xe7b   :  { %2859 = vmatpush3.xpose.msk.msra.mxu0 %vm204_vm2, %v1712_v9  ;;  %v2606_v9 = vld [vmem:[%s3651_s6 + $0x30] sm:$0xff] }
 0xe7c   :  { %2868 = vmatprep.subr.mxu0 %v3112_v36 }
 0xe7e   :  { %2861 = vmatmul.mubr.msk.f32.vlgmr.msra.gmra.mrb[12].mxu0 %vm204_vm2, %v3464_v5  ;;  %v1877_v11 = vpop.permute.xlu1 %1876 }
 0xe7f   :  { %2869 = vmatpush3.xpose.msk.msra.mxu0 %vm204_vm2, %v1879_v10  ;;  %2870 = vmatprep.mubr.msk.f32.mxu0 %vm3113_vm1, %v3112_v36  ;;  %v2978_v10 = vpack.c.bf16 %v2605_v8, %v2604_v7  ;;  %v2627_v7 = vld [vmem:[%s3657_s12 + $0x58] sm:$0xff]  ;;  %v2628_v8 = vld [vmem:[%s3657_s12 + $0x60] sm:$0xff] }
 0xe81   :  { %2979 = vmatprep.subr.bf16.mxu0 %v2978_v10 }
 0xe82   :  { %2871 = vmatmul.mubr.msk.f32.vlgmr.msra.gmra.mrb[14].mxu0 %vm204_vm2, %v1877_v11  ;;  %v2607_v11 = vld [vmem:[%s3651_s6 + $0x38] sm:$0xff] }
 0xe83   :  { %2981 = vmatpush3.bf16.msra.mxu0 %v2978_v10 }
 0xf49   :  { %v1445_v12 = vpop.f32.mrb[16].mxu1 }
 0xf4a   :  { %v1449_v13 = vmul.f32 0.25, %v1445_v12  ;;  %v2842_v14 = vpop.f32.mrb[17].mxu1  ;;  %v1612_v15 = vpop.f32.mrb[10].mxu0  ;;  %v2982_v12 = vpack.c.bf16 %v2607_v11, %v2606_v9  ;;  %v2629_v9 = vld [vmem:[%s3657_s12 + $0x68] sm:$0xff]  ;;  %v2630_v11 = vld [vmem:[%s3657_s12 + $0x70] sm:$0xff] }
 0xf4b   :  { %v1616_v16 = vmul.f32 0.25, %v1612_v15  ;;  %v2852_v17 = vpop.f32.mrb[11].mxu0  ;;  %v3002_v10 = vpack.c.bf16 %v2629_v9, %v2628_v8 }
 0xf4c   :  { %v1450_v18 = vadd.f32 %v1449_v13, %v3289_v49  ;;  %2983 = vmatprep.subr.bf16.mxu0 %v2982_v12 }
 0xf4d   :  { %v1617_v19 = vadd.f32 %v1616_v16, %v3289_v49  ;;  %2985 = vmatpush3.bf16.msra.mxu0 %v2982_v12  ;;  %v2631_v12 = vld [vmem:[%s3657_s12 + $0x78] sm:$0xff] }
 0xf4e   :  { %v1451_v20 = vsel %vm285_vm3, %v1450_v18, -inf }
 0xf4f   :  { %1452 = vmax.xlane.f32.xlu0 %v1451_v20  ;;  %v1618_v21 = vsel %vm285_vm3, %v1617_v19, -inf }
 0xf50   :  { %1619 = vmax.xlane.f32.xlu1 %v1618_v21 }
 0xf51   :  { %v1783_v22 = vpop.f32.mrb[12].mxu0 }
 0xf52   :  { %v1787_v23 = vmul.f32 0.25, %v1783_v22  ;;  %v2862_v35 = vpop.f32.mrb[13].mxu0 }
 0xf54   :  { %v1788_v33 = vadd.f32 %v1787_v23, %v3293_v56 }
 0xf55   :  { %v1950_v24 = vpop.f32.mrb[14].mxu0 }
 0xf56   :  { %v1954_v25 = vmul.f32 0.25, %v1950_v24  ;;  %v2872_v26 = vpop.f32.mrb[15].mxu0  ;;  %v1789_v27 = vsel %vm285_vm3, %v1788_v33, -inf }
 0xf57   :  { %1790 = vmax.xlane.f32.xlu0 %v1789_v27 }
 0xf58   :  { %v1955_v28 = vadd.f32 %v1954_v25, %v3293_v56 }
 0xf5a   :  { %v1956_v49 = vsel %vm285_vm3, %v1955_v28, -inf }
 0xf5b   :  { %1957 = vmax.xlane.f32.xlu0 %v1956_v49 }
 0xfdc   :  { %v1453_v29 = vpop.xlane.xlu0 %1452 }
 0xfdd   :  { %v1454_v30 = vsub.f32 %v1450_v18, %v1453_v29  ;;  %v1620_v31 = vpop.xlane.xlu1 %1619 }
 0xfde   :  { %v1621_v32 = vsub.f32 %v1617_v19, %v1620_v31 }
 0xfdf   :  { %v1455_v34 = vmul.f32 1.442695, %v1454_v30 }
 0xfe0   :  { %v1622_v37 = vmul.f32 1.442695, %v1621_v32 }
 0xfe1   :  { %3058 = vpow2.f32 %v1455_v34 }
 0xfe2   :  { %3060 = vpow2.f32 %v1622_v37 }
 0xfe4   :  { %v1791_v38 = vpop.xlane.xlu0 %1790 }
 0xfe5   :  { %v1792_v39 = vsub.f32 %v1788_v33, %v1791_v38  ;;  %v2609_v33 = vld [vmem:[%s3652_s7 + $0x1] ss:$0 sm:$0xff] }
 0xfe7   :  { %v1793_v40 = vmul.f32 1.442695, %v1792_v39 }
 0xfe8   :  { %v1958_v47 = vpop.xlane.xlu0 %1957 }
 0xfe9   :  { %3062 = vpow2.f32 %v1793_v40  ;;  %v1959_v48 = vsub.f32 %v1955_v28, %v1958_v47 }
 0xfeb   :  { %v3059_v42 = vpop.eup %3058  ;;  %v1960_v50 = vmul.f32 1.442695, %v1959_v48 }
 0xfec   :  { %v3061_v43 = vpop.eup %3060  ;;  %v1457_v44 = vsel %vm285_vm3, %v3059_v42, 0.0 }
 0xfed   :  { %1458 = vadd.xlane.f32.xlu0 %v1457_v44  ;;  %v1624_v56 = vsel %vm285_vm3, %v3061_v43, 0.0  ;;  %3064 = vpow2.f32 %v1960_v50  ;;  %v2617_v44 = vld [vmem:[%s3655_s10 + $0x28] sm:$0xff] }
 0xfee   :  { %1625 = vadd.xlane.f32.xlu1 %v1624_v56 }
 0xff3   :  { %v3063_v45 = vpop.eup %3062 }
 0xff4   :  { %v1795_v46 = vsel %vm285_vm3, %v3063_v45, 0.0 }
 0xff5   :  { %1796 = vadd.xlane.f32.xlu0 %v1795_v46  ;;  %v2619_v46 = vld [vmem:[%s3655_s10 + $0x38] sm:$0xff] }
 0xff7   :  { %v3065_v51 = vpop.eup %3064 }
 0xff8   :  { %v1962_v41 = vsel %vm285_vm3, %v3065_v51, 0.0 }
 0xfff   :  { %1629 = vrot.lane.b32.xlu1 %v3458_v4, %s3118_s23 }
0x1003   :  { %1800 = vrot.lane.b32.xlu1 %v3464_v5, %s3117_s2 }
0x100b   :  { %1462 = vrot.lane.b32.xlu0 %v3458_v4, %s3117_s2 }
0x1027   :  { %1963 = vadd.xlane.f32.xlu1 %v1962_v41 }
0x1038   :  { %1967 = vrot.lane.b32.xlu1 %v3464_v5, %s3118_s23 }
0x107a   :  { %v1459_v52 = vpop.xlane.xlu0 %1458 }
0x107b   :  { %3066 = vrcp.f32 %v1459_v52  ;;  %v1626_v53 = vpop.xlane.xlu1 %1625 }
0x107c   :  { %3068 = vrcp.f32 %v1626_v53 }
0x107f   :  { %v1630_v58 = vpop.permute.xlu1 %1629 }
0x1082   :  { %v1797_v54 = vpop.xlane.xlu0 %1796 }
0x1083   :  { %3070 = vrcp.f32 %v1797_v54  ;;  %v1801_v62 = vpop.permute.xlu1 %1800 }
0x1085   :  { %v3067_v55 = vpop.eup %3066 }
0x1086   :  { %v1461_v57 = vmul.f32 %v3067_v55, %v3059_v42  ;;  %v1463_v59 = vpop.permute.xlu0 %1462  ;;  %v3069_v60 = vpop.eup %3068  ;;  %v2614_v55 = vld [vmem:[%s3653_s8 + $0x1] ss:$0 sm:$0xff] }
0x1087   :  { %2844 = vmatpush3.msra.mxu1 %v1463_v59  ;;  %v1628_v61 = vmul.f32 %v3069_v60, %v3061_v43 }
0x1088   :  { %2846 = vmatmul.mubr.msk.f32.vlgmr.msra.gmra.mrb[18].mxu1 %vm285_vm3, %v1461_v57  ;;  %2853 = vmatprep.subr.mxu1 %v3112_v36 }
0x1089   :  { %2854 = vmatpush3.msra.mxu1 %v1630_v58  ;;  %2855 = vmatprep.mubr.msk.f32.mxu1 %vm3113_vm1, %v3112_v36  ;;  %v2615_v58 = vld [vmem:[%s3654_s9 + $0x1] ss:$0 sm:$0xff] }
0x108a   :  { %2863 = vmatprep.subr.mxu1 %v3112_v36 }
0x108c   :  { %2856 = vmatmul.mubr.msk.f32.vlgmr.msra.gmra.mrb[20].mxu1 %vm285_vm3, %v1628_v61 }
0x108d   :  { %v3071_v1 = vpop.eup %3070  ;;  %2864 = vmatpush3.msra.mxu1 %v1801_v62  ;;  %2865 = vmatprep.mubr.msk.f32.mxu1 %vm3113_vm1, %v3112_v36 }
0x108e   :  { %v1799_v2 = vmul.f32 %v3071_v1, %v3063_v45  ;;  %2873 = vmatprep.subr.mxu1 %v3112_v36  ;;  %v2618_v45 = vld [vmem:[%s3655_s10 + $0x30] sm:$0xff] }
0x108f   :  { %v2990_v47 = vpack.c.bf16 %v2619_v46, %v2618_v45 }
0x1090   :  { %2866 = vmatmul.mubr.msk.f32.vlgmr.msra.gmra.mrb[22].mxu1 %vm285_vm3, %v1799_v2 }
0x1091   :  { %2875 = vmatprep.mubr.msk.f32.mxu1 %vm3113_vm1, %v3112_v36 }
0x10b4   :  { %v1964_v3 = vpop.xlane.xlu1 %1963 }
0x10b5   :  { %3072 = vrcp.f32 %v1964_v3  ;;  %v2624_v3 = vld [vmem:[%s3657_s12 + $0x40] sm:$0xff] }
0x10b8   :  { %v1968_v4 = vpop.permute.xlu1 %1967 }
0x10b9   :  { %2874 = vmatpush3.msra.mxu1 %v1968_v4  ;;  %v2625_v4 = vld [vmem:[%s3657_s12 + $0x48] sm:$0xff] }
0x10bf   :  { %v3073_v5 = vpop.eup %3072 }
0x10c0   :  { %v1966_v6 = vmul.f32 %v3073_v5, %v3065_v51  ;;  %v2994_v5 = vpack.c.bf16 %v2625_v4, %v2624_v3 }
0x10c2   :  { %2876 = vmatmul.mubr.msk.f32.vlgmr.msra.gmra.mrb[24].mxu1 %vm285_vm3, %v1966_v6  ;;  %2995 = vmatprep.subr.bf16.mxu0 %v2994_v5  ;;  %v2626_v6 = vld [vmem:[%s3657_s12 + $0x50] sm:$0xff] }
0x115b   :  { %v1534_v13 = vpop.f32.mrb[18].mxu1 }
0x115c   :  { %v2847_v14 = vpop.f32.mrb[19].mxu1 }
0x115d   :  { %v2621_v14 = vld [vmem:[%s3656_s11 + $0x1] ss:$0 sm:$0xff] }
0x115f   :  { %v1701_v15 = vpop.f32.mrb[20].mxu1 }
0x1160   :  { %1706 = vrot.lane.b32.xlu0 %v1701_v15, %s3119_s20  ;;  %v2857_v16 = vpop.f32.mrb[21].mxu1 }
0x1163   :  { %v1872_v17 = vpop.f32.mrb[22].mxu1 }
0x1164   :  { %v2867_v18 = vpop.f32.mrb[23].mxu1 }
0x1195   :  { %v2039_v19 = vpop.f32.mrb[24].mxu1 }
0x1196   :  { %2044 = vrot.lane.b32.xlu1 %v2039_v19, %s3119_s20  ;;  %v2877_v20 = vpop.f32.mrb[25].mxu1 }
0x11d2   :  { %v1707_v21 = vpop.permute.xlu0 %1706 }
0x11d3   :  { %v1709_v22 = vsel %vm204_vm2, %v1534_v13, %v1707_v21  ;;  %v3006_v13 = vpack.c.bf16 %v2631_v12, %v2630_v11 }
0x11d4   :  { %2886 = vmatprep.mubr.msk.f32.mxu0 %vm64_vm0, %v1709_v22 }
0x1208   :  { %v2045_v23 = vpop.permute.xlu1 %2044 }
0x1209   :  { %v2047_v35 = vsel %vm204_vm2, %v1872_v17, %v2045_v23 }
0x120a   :  { %2887 = vmatmul.mubr.msk.f32.vlgmr.msra.gmra.mrb[16].mxu0 %vm64_vm0, %v2047_v35 }
0x120b   :  { %2997 = vmatpush3.bf16.msra.mxu0 %v2994_v5 }
0x12dd   :  { %v2888_v24 = vpop.f32.mrb[16].mxu0 }
0x12de   :  { %v2139_v25 = vadd.f32 %v2888_v24, %v2609_v33  ;;  %v2133_v26 = vpop.f32.mrb[17].mxu0 }
0x12df   :  { %v2134_v27 = vadd.f32 %v2609_v33, %v2133_v26 }
0x12e0   :  { %v2143_v28 = vadd.f32 %v2139_v25, %v3447_v0 }
0x12e1   :  { %v2142_v49 = vadd.f32 %v2134_v27, %v3445_v63  ;;  %v2616_v63 = vld [vmem:[%s3655_s10 + $0x20] sm:$0xff] }
0x12e2   :  { %v2151_v29 = vsel %vm64_vm0, %v2143_v28, 0.0  ;;  %v2986_v56 = vpack.c.bf16 %v2617_v44, %v2616_v63 }
0x12e3   :  { %2152 = vadd.xlane.f32.xlu1 %v2151_v29  ;;  %v2148_v30 = vsel %vm64_vm0, %v2142_v49, 0.0 }
0x12e4   :  { %2149 = vadd.xlane.f32.xlu0 %v2148_v30  ;;  %2987 = vmatprep.subr.bf16.mxu1 %v2986_v56 }
0x12e5   :  { %2989 = vmatpush3.bf16.msra.mxu1 %v2986_v56 }
0x12e6   :  { %2991 = vmatprep.subr.bf16.mxu1 %v2990_v47 }
0x12e9   :  { %2993 = vmatpush3.bf16.msra.mxu1 %v2990_v47 }
0x1370   :  { %v2153_v31 = vpop.xlane.xlu1 %2152 }
0x1371   :  { %v2155_v32 = vmul.f32 0.03125, %v2153_v31  ;;  %v2150_v34 = vpop.xlane.xlu0 %2149 }
0x1372   :  { %v2154_v37 = vmul.f32 0.03125, %v2150_v34 }
0x1373   :  { %v2157_v38 = vsub.f32 %v2143_v28, %v2155_v32 }
0x1374   :  { %v2156_v39 = vsub.f32 %v2142_v49, %v2154_v37  ;;  %v2633_v37 = vld [vmem:[%s3658_s13 + $0x1] ss:$0 sm:$0xff] }
0x1375   :  { %v2159_v43 = vmul.f32 %v2157_v38, %v2157_v38 }
0x1376   :  { %v2158_v40 = vmul.f32 %v2156_v39, %v2156_v39 }
0x1377   :  { %v2163_v0 = vsel %vm64_vm0, %v2159_v43, 0.0 }
0x1378   :  { %v2160_v42 = vsel %vm64_vm0, %v2158_v40, 0.0 }
0x1379   :  { %2161 = vadd.xlane.f32.xlu0 %v2160_v42 }
0x137d   :  { %2164 = vadd.xlane.f32.xlu0 %v2163_v0 }
0x1406   :  { %v2162_v48 = vpop.xlane.xlu0 %2161 }
0x1407   :  { %v2166_v50 = vmul.f32 0.03125, %v2162_v48 }
0x1409   :  { %v2168_v51 = vadd.f32 1e-12, %v2166_v50 }
0x140a   :  { %v2165_v41 = vpop.xlane.xlu0 %2164 }
0x140b   :  { %3074 = vrsqrt.f32 %v2168_v51  ;;  %v2167_v52 = vmul.f32 0.03125, %v2165_v41 }
0x140d   :  { %v2169_v53 = vadd.f32 1e-12, %v2167_v52 }
0x140f   :  { %3076 = vrsqrt.f32 %v2169_v53 }
0x1415   :  { %v3075_v54 = vpop.eup %3074 }
0x1416   :  { %v2172_v57 = vmul.f32 %v3075_v54, %v2156_v39  ;;  %v2453_v54 = vld [vmem:[%s3661_s16] sm:$0xff] }
0x1418   :  { %v2180_v59 = vmul.f32 %v2614_v55, %v2172_v57 }
0x1419   :  { %v3077_v60 = vpop.eup %3076 }
0x141a   :  { %v2173_v61 = vmul.f32 %v3077_v60, %v2157_v38  ;;  %v2188_v62 = vadd.f32 %v2615_v58, %v2180_v59  ;;  %v2456_v59 = vld [vmem:[%s3661_s16 + $0x18] sm:$0xff]  ;;  %v3120_v60 = vmov 0.0|0.0  }
0x141b   :  { %3010 = vmatprep.subr.bf16.mxu1 %v3120_v60 }
0x141c   :  { %v2181_v1 = vmul.f32 %v2614_v55, %v2173_v61  ;;  %2897 = vmatprep.mubr.msk.f32.mxu1 %vm64_vm0, %v2188_v62  ;;  %v2454_v55 = vld [vmem:[%s3661_s16 + $0x8] sm:$0xff] }
0x141d   :  { %v3011_v57 = vpack.c.bf16 %v2454_v55, %v2453_v54 }
0x141e   :  { %v2189_v2 = vadd.f32 %v2615_v58, %v2181_v1  ;;  %v2455_v58 = vld [vmem:[%s3661_s16 + $0x10] sm:$0xff] }
0x141f   :  { %v3014_v61 = vpack.c.bf16 %v2456_v59, %v2455_v58 }
0x1420   :  { %2898 = vmatmul.mubr.msk.f32.vlgmr.msra.gmra.mrb[26].mxu1 %vm64_vm0, %v2189_v2 }
0x1421   :  { %2927 = vmatprep.mubr.msk.f32.mxu1 %vm3113_vm1, %v3112_v36  ;;  %v2998_v36 = vpack.c.bf16 %v2627_v7, %v2626_v6  ;;  %3012 = vmatpush3.bf16.msra.mxu1 %v3011_v57  ;;  %v2638_v7 = vld [vmem:[%s3659_s14 + $0x1] ss:$0 sm:$0xff]  ;;  %s3121_s14 = smov [#allocation2]  }
0x1422   :  { %3013 = vmatprep.subr.bf16.mxu1 %v3120_v60  ;;  %s2546_s29 = sshll.u32 %s3121_s14, 4  ;;  %s2547_s29 = int_to_ptr.vmem [resolvable:$true] %s2546_s29 }
0x1423   :  { %2999 = vmatprep.subr.bf16.mxu0 %v2998_v36  ;;  %p3093_p1 = scmp.lt.s32.totalorder %s2547_s29, %s2547_s29 }
0x1424   :  { %3001 = vmatpush3.bf16.msra.mxu0 %v2998_v36 }
0x1425   :  { %3003 = vmatprep.subr.bf16.mxu0 %v3002_v10  ;;  %3015 = vmatpush3.bf16.msra.mxu1 %v3014_v61 }
0x1428   :  { %3005 = vmatpush3.bf16.msra.mxu0 %v3002_v10  ;;  %v2639_v10 = vld [vmem:[%s3660_s15 + $0x1] ss:$0 sm:$0xff]  ;;  %s3088_s15 = scalar_lea.vmem %s2547_s29, 32 }
0x1429   :  { %3007 = vmatprep.subr.bf16.mxu0 %v3006_v13  ;;  %p3089_p0 = scmp.ne.s32.totalorder %s2547_s29, %s3088_s15  ;;  %p3094_p2 = scmp.lt.s32.totalorder %s3088_s15, %s3088_s15 }
0x142b   :  { %p3095_p3 = por %p3094_p2, %p3093_p1 }
0x142c   :  { %3009 = vmatpush3.bf16.msra.mxu0 %v3006_v13 }
0x142d   :  { %p3096_p4 = pnand %p3095_p3, %p3089_p0 }
0x14f3   :  { %v2899_v15 = vpop.f32.mrb[26].mxu1 }
0x14f4   :  { %v2281_v16 = vadd.f32 %v2899_v15, %v2621_v14  ;;  %v2275_v17 = vpop.f32.mrb[27].mxu1 }
0x14f5   :  { %v2276_v18 = vadd.f32 %v2621_v14, %v2275_v17  ;;  %v2640_v17 = vld [vmem:[%s3662_s17] ss:$0 sm:$0xff] }
0x14f6   :  { %v2285_v19 = vmul.f32 %v2281_v16, %v2281_v16 }
0x14f7   :  { %v2284_v20 = vmul.f32 %v2276_v18, %v2276_v18 }
0x14f8   :  { %v2287_v21 = vmul.f32 %v2285_v19, %v2281_v16 }
0x14f9   :  { %v2286_v22 = vmul.f32 %v2284_v20, %v2276_v18 }
0x14fa   :  { %v2289_v23 = vmul.f32 0.044715, %v2287_v21 }
0x14fb   :  { %v2288_v35 = vmul.f32 0.044715, %v2286_v22 }
0x14fc   :  { %v2291_v33 = vadd.f32 %v2289_v23, %v2281_v16 }
0x14fd   :  { %v2290_v24 = vadd.f32 %v2288_v35, %v2276_v18 }
0x14fe   :  { %v2293_v25 = vmul.f32 0.7978846, %v2291_v33 }
0x14ff   :  { %v2292_v26 = vmul.f32 0.7978846, %v2290_v24 }
0x1500   :  { %3078 = vtanh.f32 %v2293_v25 }
0x1501   :  { %3080 = vtanh.f32 %v2292_v26 }
0x150a   :  { %v3079_v27 = vpop.eup %3078 }
0x150b   :  { %v3081_v28 = vpop.eup %3080  ;;  %v2297_v49 = vadd.f32 1.0, %v3079_v27 }
0x150c   :  { %v2296_v29 = vadd.f32 1.0, %v3081_v28 }
0x150d   :  { %v2299_v30 = vmul.f32 0.5, %v2297_v49 }
0x150e   :  { %v2298_v31 = vmul.f32 0.5, %v2296_v29 }
0x150f   :  { %v2301_v34 = vmul.f32 %v2299_v30, %v2281_v16 }
0x1510   :  { %v2300_v32 = vmul.f32 %v2298_v31, %v2276_v18 }
0x1512   :  { %2916 = vmatprep.mubr.msk.f32.mxu0 %vm1150_vm4, %v2300_v32 }
0x1513   :  { %2917 = vmatmul.mubr.msk.f32.vlgmr.msra.gmra.mrb[18].mxu0 %vm1150_vm4, %v2301_v34 }
0x15e6   :  { %v2918_v38 = vpop.f32.mrb[18].mxu0 }
0x15e7   :  { %v2397_v39 = vadd.f32 %v2918_v38, %v2633_v37  ;;  %v2391_v40 = vpop.f32.mrb[19].mxu0 }
0x15e8   :  { %v2392_v42 = vadd.f32 %v2633_v37, %v2391_v40 }
0x15e9   :  { %v2401_v43 = vadd.f32 %v2397_v39, %v2189_v2 }
0x15ea   :  { %v2400_v0 = vadd.f32 %v2392_v42, %v2188_v62 }
0x15eb   :  { %v2409_v63 = vsel %vm64_vm0, %v2401_v43, 0.0 }
0x15ec   :  { %2410 = vadd.xlane.f32.xlu0 %v2409_v63  ;;  %v2406_v44 = vsel %vm64_vm0, %v2400_v0, 0.0 }
0x15ed   :  { %2407 = vadd.xlane.f32.xlu1 %v2406_v44 }
0x1679   :  { %v2411_v56 = vpop.xlane.xlu0 %2410 }
0x167a   :  { %v2413_v45 = vmul.f32 0.03125, %v2411_v56  ;;  %v2408_v46 = vpop.xlane.xlu1 %2407 }
0x167b   :  { %v2412_v47 = vmul.f32 0.03125, %v2408_v46 }
0x167c   :  { %v2415_v48 = vsub.f32 %v2401_v43, %v2413_v45 }
0x167d   :  { %v2414_v50 = vsub.f32 %v2400_v0, %v2412_v47 }
0x167e   :  { %v2417_v51 = vmul.f32 %v2415_v48, %v2415_v48 }
0x167f   :  { %v2416_v41 = vmul.f32 %v2414_v50, %v2414_v50 }
0x1680   :  { %v2421_v52 = vsel %vm64_vm0, %v2417_v51, 0.0 }
0x1681   :  { %2422 = vadd.xlane.f32.xlu0 %v2421_v52  ;;  %v2418_v53 = vsel %vm64_vm0, %v2416_v41, 0.0 }
0x1682   :  { %2419 = vadd.xlane.f32.xlu1 %v2418_v53 }
0x170e   :  { %v2423_v62 = vpop.xlane.xlu0 %2422 }
0x170f   :  { %v2425_v1 = vmul.f32 0.03125, %v2423_v62  ;;  %v2420_v2 = vpop.xlane.xlu1 %2419 }
0x1710   :  { %v2424_v3 = vmul.f32 0.03125, %v2420_v2 }
0x1711   :  { %v2427_v4 = vadd.f32 1e-12, %v2425_v1 }
0x1712   :  { %v2426_v5 = vadd.f32 1e-12, %v2424_v3 }
0x1713   :  { %3082 = vrsqrt.f32 %v2427_v4 }
0x1714   :  { %3084 = vrsqrt.f32 %v2426_v5 }
0x171d   :  { %v3083_v6 = vpop.eup %3082 }
0x171e   :  { %v3085_v36 = vpop.eup %3084  ;;  %v2431_v8 = vmul.f32 %v3083_v6, %v2415_v48 }
0x171f   :  { %v2430_v9 = vmul.f32 %v3085_v36, %v2414_v50 }
0x1720   :  { %v2439_v11 = vmul.f32 %v2638_v7, %v2431_v8 }
0x1721   :  { %v2438_v12 = vmul.f32 %v2638_v7, %v2430_v9 }
0x1722   :  { %v2447_v13 = vadd.f32 %v2639_v10, %v2439_v11 }
0x1723   :  { %v2446_v14 = vadd.f32 %v2639_v10, %v2438_v12 }
0x1724   :  { %v2449_v15 = vrot.slane %v2447_v13, 7 }
0x1726   :  { %v2452_v16 = vsel %vm2451_vm5, %v2446_v14, %v2449_v15 }
0x1727   :  { %2928 = vmatmul.mubr.msk.f32.vlgmr.msra.gmra.mrb[28].mxu1 %vm64_vm0, %v2452_v16 }
0x17fa   :  { %v2533_v18 = vpop.f32.mrb[28].mxu1 }
0x17fb   :  { %v2534_v19 = vadd.f32 %v2640_v17, %v2533_v18  ;;  %v2929_v20 = vpop.f32.mrb[29].mxu1 }
0x17fd   :  { %3086 = vtanh.f32 %v2534_v19 }
0x1807   :  { %v3087_v21 = vpop.eup %3086 }
0x1808   :  { %2539 = vst.msk [vmem:[#allocation2] sm:$0x3] %vm2538_vm6, %v3087_v21 }
0x1809   :  { %3099 = shalt.err (!%p3096_p4)
}
0x180a   :  { %s3100_s17 = scalar_lea.hbm %s3663_s18, 32 }
0x180b   :  { %p3101_p5 = scmp.ne.s32.totalorder %s3663_s18, %s3100_s17  ;;  %p3104_p6 = scmp.lt.u32.totalorder %s3100_s17, %s3663_s18 }
0x180d   :  { %p3106_p7 = pnand %p3104_p6, %p3101_p5 }
0x180f   :  { %3109 = shalt.err (!%p3106_p7)
}
0x1810   :  { %2549 = dma.vmem_to_hbm [thread:$0]  %s2547_s29, 32, %s3663_s18, [#allocation3]  }
0x1811   :  { %3110 = dma.done.wait [#allocation3], 32  }
0x1812   :  { %3111 = vsyncadd [#allocation3], 4294967264 }
0x1813   :  { %2553 = vsyncpa [#allocation3], 1 }

</bundles_post_ra>
